<compile_context>
chip_gen: v7x
topology: tpu7x:2x2x1
jax: 0.10.0
libtpu: 0.0.40
codegen_flags: <defaults>
</compile_context>

<pallas_src>
import jax
import jax.numpy as jnp
import numpy as np
from jax.experimental import pallas as pl
from jax.experimental.pallas import tpu as pltpu

N_BLOCK = 2  # n_block in the module


# ---------------------------------------------------------------------------
# Pallas kernel: whole forward pass for one batched graph (fully vectorized).
# ---------------------------------------------------------------------------
def graph_embedding_kernel(
    # VMEM int32 index tensors
    src_ref,        # (E, 1) i32
    dst_ref,        # (1, E) i32
    n2g_row_ref,    # (1, V) i32
    n2g_col_ref,    # (V, 1) i32
    # VMEM feature tensors (f32)
    x_inp_ref,      # (V, Fv)
    edge_attr_ref,  # (E, Fe)
    gx_ref,         # (N, Fc)
    # weights (bf16) / biases (f32)
    w_ne_x_ref, w_ne_g_ref, b_ne_ref,
    w_ee_ref, b_ee_ref,
    w_blk_ref, b_blk_ref,             # (n_block, H, H), (n_block, 1, H)
    w_fin_h_ref, w_fin_x_ref, b_fin_ref,
    w_r1_ref, b_r1_ref,
    w_r2_p_ref, w_r2_g_ref, b_r2_ref,
    # outputs
    x_out_ref,      # (V, H)   f32
    z_out_ref,      # (N, Zd)  f32
):
    f32 = jnp.float32
    bf16 = jnp.bfloat16
    V = x_inp_ref.shape[0]
    E = edge_attr_ref.shape[0]
    N = gx_ref.shape[0]

    def silu(x):
        return x * jax.nn.sigmoid(x)

    # bf16 operands on the MXU, f32 accumulation.
    def mm(a_f32, w_bf16):
        return jnp.dot(a_f32.astype(bf16), w_bf16, preferred_element_type=f32)

    # exact {0,1} bf16 one-hots built on the VPU from iota == index
    def one_hot(shape, iota_dim, idx):
        m = jax.lax.broadcasted_iota(jnp.int32, shape, iota_dim) == idx
        return jnp.where(m, 1.0, 0.0).astype(bf16)

    gather_oh = one_hot((E, V), 1, src_ref[...])      # [e,v] = (src[e] == v)
    scatter_oh = one_hot((V, E), 0, dst_ref[...])     # [v,e] = (dst[e] == v)
    pool_oh = one_hot((N, V), 0, n2g_row_ref[...])    # [g,v] = (n2g[v] == g)
    bcast_oh = one_hot((V, N), 1, n2g_col_ref[...])   # [v,g] = (n2g[v] == g)

    x_inp = x_inp_ref[...]
    gx = gx_ref[...]

    # ---- node embedding: Linear(concat([x_inp, gx[n2g]])) + SiLU (split weights,
    #      global part broadcast to nodes via the (V,N) one-hot matmul)
    gxc = mm(gx, w_ne_g_ref[...])                                            # (N, H)
    node_gx = jnp.dot(bcast_oh, gxc.astype(bf16), preferred_element_type=f32)  # (V, H)
    x_emb = silu(mm(x_inp, w_ne_x_ref[...]) + node_gx + b_ne_ref[...])       # (V, H)

    # ---- edge embedding
    e_emb = silu(mm(edge_attr_ref[...], w_ee_ref[...]) + b_ee_ref[...])      # (E, H)

    # ---- residual message-passing blocks:
    #      gather / scatter-add are full-vreg MXU one-hot matmuls (no loops)
    for blk in range(N_BLOCK):
        x_src = jnp.dot(gather_oh, x_emb.astype(bf16),
                        preferred_element_type=f32)                          # (E, H)
        msg = silu(x_src + e_emb)                                            # (E, H)
        agg = jnp.dot(scatter_oh, msg.astype(bf16),
                      preferred_element_type=f32)                            # (V, H)
        x_emb = x_emb + silu(mm(x_emb + agg, w_blk_ref[blk]) + b_blk_ref[blk])

    # ---- final node embedding on concat([x_emb, x_inp]) (split weights)
    x_upd = silu(
        mm(x_emb, w_fin_h_ref[...])
        + mm(x_inp, w_fin_x_ref[...])
        + b_fin_ref[...]
    )
    x_out_ref[...] = x_upd

    # ---- readout: node Linear+SiLU -> per-graph sum pool (MXU) -> Linear+SiLU
    h1 = silu(mm(x_upd, w_r1_ref[...]) + b_r1_ref[...])                      # (V, Zd)
    pooled = jnp.dot(pool_oh, h1.astype(bf16), preferred_element_type=f32)   # (N, Zd)
    z_out_ref[...] = silu(
        mm(pooled, w_r2_p_ref[...])
        + mm(gx, w_r2_g_ref[...])
        + b_r2_ref[...]
    )


# ---------------------------------------------------------------------------
# Wrapper: index layout prep, bf16 weight casts, pallas_call
# ---------------------------------------------------------------------------
@jax.jit
def graph_embedding_forward(x_inp, edge_index, edge_attr, global_x, node2graph, params):
    V, Fv = x_inp.shape
    E, Fe = edge_attr.shape
    N, Fc = global_x.shape
    H = params["w_ne"].shape[1]
    Zd = params["w_r1"].shape[1]
    f32, bf16 = jnp.float32, jnp.bfloat16

    src_col = edge_index[0].astype(jnp.int32).reshape(E, 1)
    dst_row = edge_index[1].astype(jnp.int32).reshape(1, E)
    n2g_row = node2graph.astype(jnp.int32).reshape(1, V)
    n2g_col = node2graph.astype(jnp.int32).reshape(V, 1)

    wb = lambda a: a.astype(bf16)   # MXU operands in bf16
    w_ne = params["w_ne"]           # (Fv+Fc, H) -> split in the wrapper

    inputs = (
        src_col, dst_row, n2g_row, n2g_col,
        x_inp.astype(f32), edge_attr.astype(f32), global_x.astype(f32),
        wb(w_ne[:Fv]), wb(w_ne[Fv:]), params["b_ne"],
        wb(params["w_ee"]), params["b_ee"],
        wb(params["w_blk"]), params["b_blk"],
        wb(params["w_fin_h"]), wb(params["w_fin_x"]), params["b_fin"],
        wb(params["w_r1"]), params["b_r1"],
        wb(params["w_r2_p"]), wb(params["w_r2_g"]), params["b_r2"],
    )

    vmem = pl.BlockSpec(memory_space=pltpu.MemorySpace.VMEM)
    in_specs = [vmem] * len(inputs)

    # ---- generation-aware VMEM budget (v7x: 64 MiB physical, v5e/v6e: 128 MiB)
    in_bytes = sum(int(np.prod(t.shape)) * t.dtype.itemsize for t in inputs)
    out_bytes = 4 * (V * H + N * Zd)
    interm_bytes = (4 * (2 * V * H + E * H + V * Zd)          # x_emb, agg/msg, e_emb, h1 (f32)
                    + 2 * (2 * E * V + N * V + V * N))        # bf16 one-hots
    resident = in_bytes + out_bytes + interm_bytes
    try:
        vmem_cap = int(getattr(pltpu.get_tpu_info(), "vmem_capacity_bytes",
                               64 * 1024 * 1024))
    except Exception:
        vmem_cap = 64 * 1024 * 1024
    vmem_limit = int(min(max(int(1.5 * resident), 16 * 1024 * 1024),
                         vmem_cap - 8 * 1024 * 1024))

    # ---- advisory cost estimate so XLA schedules surrounding ops sensibly
    flops = 2 * (V * Fv * H + N * Fc * H + V * N * H + E * Fe * H
                 + N_BLOCK * (2 * E * V * H + V * H * H)
                 + V * H * H + V * Fv * H
                 + V * H * Zd + N * V * Zd + N * Zd * Zd + N * Fc * Zd)
    transcendentals = (V * H * (2 + N_BLOCK) + E * H * (1 + N_BLOCK)
                       + V * Zd + N * Zd)
    cost = pl.CostEstimate(flops=flops, transcendentals=transcendentals,
                           bytes_accessed=in_bytes + out_bytes)

    x_out, z_out = pl.pallas_call(
        graph_embedding_kernel,
        out_shape=(
            jax.ShapeDtypeStruct((V, H), f32),
            jax.ShapeDtypeStruct((N, Zd), f32),
        ),
        in_specs=in_specs,
        out_specs=(vmem, vmem),
        compiler_params=pltpu.CompilerParams(vmem_limit_bytes=vmem_limit),
        cost_estimate=cost,
    )(*inputs)
    return x_out, z_out


# ---------------------------------------------------------------------------
# Pure-JAX reference.
#   mxu_bf16=True  : mirrors the kernel exactly (bf16 MXU operands, bf16
#                    rounding before the one-hot gather/scatter/pool/broadcast).
#   mxu_bf16=False : original full-f32 module math.
# ---------------------------------------------------------------------------
def reference_forward(x_inp, edge_index, edge_attr, global_x, node2graph, params,
                      mxu_bf16=True):
    V, Fv = x_inp.shape
    N = global_x.shape[0]
    if mxu_bf16:
        cast = lambda a: a.astype(jnp.bfloat16)
        rnd = lambda a: a.astype(jnp.bfloat16).astype(jnp.float32)
    else:
        cast = lambda a: a
        rnd = lambda a: a
    dot = lambda a, w: jnp.dot(cast(a), cast(w), preferred_element_type=jnp.float32)
    silu = lambda x: x * jax.nn.sigmoid(x)

    w_ne = params["w_ne"]
    gxc = dot(global_x, w_ne[Fv:])
    x_emb = silu(dot(x_inp, w_ne[:Fv]) + rnd(gxc)[node2graph] + params["b_ne"])
    e_emb = silu(dot(edge_attr, params["w_ee"]) + params["b_ee"])
    src, dst = edge_index[0], edge_index[1]
    for i in range(N_BLOCK):
        msg = silu(rnd(x_emb)[src] + e_emb)
        agg = jax.ops.segment_sum(rnd(msg), dst, num_segments=V)
        x_emb = x_emb + silu(dot(x_emb + agg, params["w_blk"][i]) + params["b_blk"][i])
    x_upd = silu(
        dot(x_emb, params["w_fin_h"]) + dot(x_inp, params["w_fin_x"]) + params["b_fin"]
    )
    h1 = silu(dot(x_upd, params["w_r1"]) + params["b_r1"])
    pooled = jax.ops.segment_sum(rnd(h1), node2graph, num_segments=N)
    z = silu(
        dot(pooled, params["w_r2_p"]) + dot(global_x, params["w_r2_g"]) + params["b_r2"]
    )
    return x_upd, z


# ---------------------------------------------------------------------------
# Deterministic parameter init
# ---------------------------------------------------------------------------
def init_params(key, Fv, Fe, Fc, H, Zd, n_block):
    ks = jax.random.split(key, 15)

    def w(k, fi, fo, fan=None):
        fan = fan or fi
        return (jax.random.normal(k, (fi, fo), jnp.float32) / np.sqrt(fan)).astype(jnp.float32)

    def b(k, fo):
        return (0.1 * jax.random.normal(k, (1, fo), jnp.float32)).astype(jnp.float32)

    return {
        # node embedding acts on concat([x_inp, global_x[node2graph]])
        "w_ne": w(ks[0], Fv + Fc, H),
        "b_ne": b(ks[1], H),
        "w_ee": w(ks[2], Fe, H),
        "b_ee": b(ks[3], H),
        "w_blk": (jax.random.normal(ks[4], (n_block, H, H), jnp.float32) / np.sqrt(H)).astype(jnp.float32),
        "b_blk": (0.1 * jax.random.normal(ks[5], (n_block, 1, H), jnp.float32)).astype(jnp.float32),
        # final node embedding acts on concat([x_emb, x_inp]) (split weights)
        "w_fin_h": w(ks[6], H, H, H + Fv),
        "w_fin_x": w(ks[7], Fv, H, H + Fv),
        "b_fin": b(ks[8], H),
        "w_r1": w(ks[9], H, Zd),
        "b_r1": b(ks[10], Zd),
        # readout layer 2 acts on concat([pooled, global_x]) (split weights)
        "w_r2_p": w(ks[11], Zd, Zd, Zd + Fc),
        "w_r2_g": w(ks[12], Fc, Zd, Zd + Fc),
        "b_r2": b(ks[13], Zd),
    }


if __name__ == "__main__":
    key = jax.random.PRNGKey(0)
    N_GRAPH = 4
    NODES_PER_GRAPH = 16
    EDGES_PER_GRAPH = 32
    V = N_GRAPH * NODES_PER_GRAPH       # 64 nodes
    E = N_GRAPH * EDGES_PER_GRAPH       # 128 edges
    Fv, Fe, Fc = 16, 8, 8               # node / edge / global input dims
    H, Zd = 128, 128                    # lane-dense hidden / graph-vector dims

    ks = jax.random.split(key, 8)
    x_inp = jax.random.normal(ks[0], (V, Fv), jnp.float32)
    edge_attr = jax.random.normal(ks[1], (E, Fe), jnp.float32)
    global_x = jax.random.normal(ks[2], (N_GRAPH, Fc), jnp.float32)
    node2graph = jnp.repeat(jnp.arange(N_GRAPH, dtype=jnp.int32), NODES_PER_GRAPH)

    # edges stay inside their own graph (nodes [g*16, (g+1)*16) belong to graph g)
    src = jax.random.randint(ks[3], (E,), 0, NODES_PER_GRAPH, dtype=jnp.int32)
    dst = jax.random.randint(ks[4], (E,), 0, NODES_PER_GRAPH, dtype=jnp.int32)
    offset = jnp.repeat(
        jnp.arange(N_GRAPH, dtype=jnp.int32) * NODES_PER_GRAPH, EDGES_PER_GRAPH
    )
    edge_index = jnp.stack([src + offset, dst + offset])     # (2, E)

    params = init_params(ks[5], Fv, Fe, Fc, H, Zd, N_BLOCK)

    x_out, z_out = graph_embedding_forward(
        x_inp, edge_index, edge_attr, global_x, node2graph, params
    )
    jax.block_until_ready((x_out, z_out))

    # (a) structural check: precision-matched reference (same bf16 MXU operands,
    #     same bf16 rounding points) must agree tightly.
    x_ref, z_ref = reference_forward(
        x_inp, edge_index, edge_attr, global_x, node2graph, params, mxu_bf16=True
    )
    np.testing.assert_allclose(np.asarray(x_out), np.asarray(x_ref), rtol=5e-3, atol=5e-3)
    np.testing.assert_allclose(np.asarray(z_out), np.asarray(z_ref), rtol=5e-3, atol=5e-3)

    # (b) drift sanity bound vs. full-f32 module math: bf16 rounding makes a
    #     tight per-element *relative* bound meaningless near SiLU zero-crossings,
    #     so bound the Frobenius-norm relative error instead.
    x_f32, z_f32 = reference_forward(
        x_inp, edge_index, edge_attr, global_x, node2graph, params, mxu_bf16=False
    )

    def rel_norm_err(a, b):
        a = np.asarray(a, np.float64)
        b = np.asarray(b, np.float64)
        return float(np.linalg.norm(a - b) / (np.linalg.norm(b) + 1e-12))

    ex = rel_norm_err(x_out, x_f32)
    ez = rel_norm_err(z_out, z_f32)
    assert ex < 5e-2 and ez < 5e-2, f"bf16 drift too large: x={ex:.3e} z={ez:.3e}"

    print("KERNEL_OK")
</pallas_src>

<mosaic_0001>
module attributes {stable_mosaic.version = 11 : i64} {
  func.func @graph_embedding_kernel(%arg0: memref<128x1xi32, #tpu.memory_space<vmem>>, %arg1: memref<1x128xi32, #tpu.memory_space<vmem>>, %arg2: memref<1x64xi32, #tpu.memory_space<vmem>>, %arg3: memref<64x1xi32, #tpu.memory_space<vmem>>, %arg4: memref<64x16xf32, #tpu.memory_space<vmem>>, %arg5: memref<128x8xf32, #tpu.memory_space<vmem>>, %arg6: memref<4x8xf32, #tpu.memory_space<vmem>>, %arg7: memref<16x128xbf16, #tpu.memory_space<vmem>>, %arg8: memref<8x128xbf16, #tpu.memory_space<vmem>>, %arg9: memref<1x128xf32, #tpu.memory_space<vmem>>, %arg10: memref<8x128xbf16, #tpu.memory_space<vmem>>, %arg11: memref<1x128xf32, #tpu.memory_space<vmem>>, %arg12: memref<2x128x128xbf16, #tpu.memory_space<vmem>>, %arg13: memref<2x1x128xf32, #tpu.memory_space<vmem>>, %arg14: memref<128x128xbf16, #tpu.memory_space<vmem>>, %arg15: memref<16x128xbf16, #tpu.memory_space<vmem>>, %arg16: memref<1x128xf32, #tpu.memory_space<vmem>>, %arg17: memref<128x128xbf16, #tpu.memory_space<vmem>>, %arg18: memref<1x128xf32, #tpu.memory_space<vmem>>, %arg19: memref<128x128xbf16, #tpu.memory_space<vmem>>, %arg20: memref<8x128xbf16, #tpu.memory_space<vmem>>, %arg21: memref<1x128xf32, #tpu.memory_space<vmem>>, %arg22: memref<64x128xf32, #tpu.memory_space<vmem>>, %arg23: memref<4x128xf32, #tpu.memory_space<vmem>>) attributes {dimension_semantics = [], scalar_prefetch = 0 : i64, scratch_operands = 0 : i64, tpu.core_type = #tpu.core_type<tc>} {
    %c0 = arith.constant 0 : index
    %c0_0 = arith.constant 0 : index
    %0 = vector.load %arg0[%c0, %c0_0] : memref<128x1xi32, #tpu.memory_space<vmem>>, vector<128x1xi32>
    %1 = tpu.iota {dimensions = array<i32: 1>} : vector<128x64xi32>
    %2 = vector.broadcast %0 : vector<128x1xi32> to vector<128x64xi32>
    %3 = arith.cmpi eq, %1, %2 : vector<128x64xi32>
    %cst = arith.constant 1.000000e+00 : f32
    %cst_1 = arith.constant 0.000000e+00 : f32
    %4 = vector.broadcast %cst : f32 to vector<128x64xf32>
    %5 = vector.broadcast %cst_1 : f32 to vector<128x64xf32>
    %6 = arith.select %3, %4, %5 : vector<128x64xi1>, vector<128x64xf32>
    %7 = arith.truncf %6 : vector<128x64xf32> to vector<128x64xbf16>
    %c0_2 = arith.constant 0 : index
    %c0_3 = arith.constant 0 : index
    %8 = vector.load %arg1[%c0_2, %c0_3] : memref<1x128xi32, #tpu.memory_space<vmem>>, vector<1x128xi32>
    %9 = tpu.iota {dimensions = array<i32: 0>} : vector<64x128xi32>
    %10 = vector.broadcast %8 : vector<1x128xi32> to vector<64x128xi32>
    %11 = arith.cmpi eq, %9, %10 : vector<64x128xi32>
    %cst_4 = arith.constant 1.000000e+00 : f32
    %cst_5 = arith.constant 0.000000e+00 : f32
    %12 = vector.broadcast %cst_4 : f32 to vector<64x128xf32>
    %13 = vector.broadcast %cst_5 : f32 to vector<64x128xf32>
    %14 = arith.select %11, %12, %13 : vector<64x128xi1>, vector<64x128xf32>
    %15 = arith.truncf %14 : vector<64x128xf32> to vector<64x128xbf16>
    %c0_6 = arith.constant 0 : index
    %c0_7 = arith.constant 0 : index
    %16 = vector.load %arg2[%c0_6, %c0_7] : memref<1x64xi32, #tpu.memory_space<vmem>>, vector<1x64xi32>
    %17 = tpu.iota {dimensions = array<i32: 0>} : vector<4x64xi32>
    %18 = vector.broadcast %16 : vector<1x64xi32> to vector<4x64xi32>
    %19 = arith.cmpi eq, %17, %18 : vector<4x64xi32>
    %cst_8 = arith.constant 1.000000e+00 : f32
    %cst_9 = arith.constant 0.000000e+00 : f32
    %20 = vector.broadcast %cst_8 : f32 to vector<4x64xf32>
    %21 = vector.broadcast %cst_9 : f32 to vector<4x64xf32>
    %22 = arith.select %19, %20, %21 : vector<4x64xi1>, vector<4x64xf32>
    %23 = arith.truncf %22 : vector<4x64xf32> to vector<4x64xbf16>
    %c0_10 = arith.constant 0 : index
    %c0_11 = arith.constant 0 : index
    %24 = vector.load %arg3[%c0_10, %c0_11] : memref<64x1xi32, #tpu.memory_space<vmem>>, vector<64x1xi32>
    %25 = tpu.iota {dimensions = array<i32: 1>} : vector<64x4xi32>
    %26 = vector.broadcast %24 : vector<64x1xi32> to vector<64x4xi32>
    %27 = arith.cmpi eq, %25, %26 : vector<64x4xi32>
    %cst_12 = arith.constant 1.000000e+00 : f32
    %cst_13 = arith.constant 0.000000e+00 : f32
    %28 = vector.broadcast %cst_12 : f32 to vector<64x4xf32>
    %29 = vector.broadcast %cst_13 : f32 to vector<64x4xf32>
    %30 = arith.select %27, %28, %29 : vector<64x4xi1>, vector<64x4xf32>
    %31 = arith.truncf %30 : vector<64x4xf32> to vector<64x4xbf16>
    %c0_14 = arith.constant 0 : index
    %c0_15 = arith.constant 0 : index
    %32 = vector.load %arg4[%c0_14, %c0_15] : memref<64x16xf32, #tpu.memory_space<vmem>>, vector<64x16xf32>
    %c0_16 = arith.constant 0 : index
    %c0_17 = arith.constant 0 : index
    %33 = vector.load %arg6[%c0_16, %c0_17] : memref<4x8xf32, #tpu.memory_space<vmem>>, vector<4x8xf32>
    %c0_18 = arith.constant 0 : index
    %c0_19 = arith.constant 0 : index
    %34 = vector.load %arg8[%c0_18, %c0_19] : memref<8x128xbf16, #tpu.memory_space<vmem>>, vector<8x128xbf16>
    %35 = arith.truncf %33 : vector<4x8xf32> to vector<4x8xbf16>
    %cst_20 = arith.constant dense<0.000000e+00> : vector<4x128xf32>
    %36 = tpu.matmul %35, %34, %cst_20 {dimension_numbers = #tpu.dot_dimension_numbers<[1], [0], [0], [1], [0, 0, 1, 1], [], []>} : vector<4x8xbf16>, vector<8x128xbf16>, vector<4x128xf32> -> vector<4x128xf32>
    %37 = arith.truncf %36 : vector<4x128xf32> to vector<4x128xbf16>
    %cst_21 = arith.constant dense<0.000000e+00> : vector<64x128xf32>
    %38 = tpu.matmul %31, %37, %cst_21 {dimension_numbers = #tpu.dot_dimension_numbers<[1], [0], [0], [1], [0, 0, 1, 1], [], []>} : vector<64x4xbf16>, vector<4x128xbf16>, vector<64x128xf32> -> vector<64x128xf32>
    %c0_22 = arith.constant 0 : index
    %c0_23 = arith.constant 0 : index
    %39 = vector.load %arg7[%c0_22, %c0_23] : memref<16x128xbf16, #tpu.memory_space<vmem>>, vector<16x128xbf16>
    %40 = arith.truncf %32 : vector<64x16xf32> to vector<64x16xbf16>
    %cst_24 = arith.constant dense<0.000000e+00> : vector<64x128xf32>
    %41 = tpu.matmul %40, %39, %cst_24 {dimension_numbers = #tpu.dot_dimension_numbers<[1], [0], [0], [1], [0, 0, 1, 1], [], []>} : vector<64x16xbf16>, vector<16x128xbf16>, vector<64x128xf32> -> vector<64x128xf32>
    %42 = arith.addf %41, %38 : vector<64x128xf32>
    %c0_25 = arith.constant 0 : index
    %c0_26 = arith.constant 0 : index
    %43 = vector.load %arg9[%c0_25, %c0_26] : memref<1x128xf32, #tpu.memory_space<vmem>>, vector<1x128xf32>
    %44 = vector.broadcast %43 : vector<1x128xf32> to vector<64x128xf32>
    %45 = arith.addf %42, %44 : vector<64x128xf32>
    %46 = arith.negf %45 : vector<64x128xf32>
    %47 = math.exp %46 : vector<64x128xf32>
    %cst_27 = arith.constant 1.000000e+00 : f32
    %48 = vector.broadcast %cst_27 : f32 to vector<64x128xf32>
    %49 = arith.addf %48, %47 : vector<64x128xf32>
    %50 = arith.divf %48, %49 : vector<64x128xf32>
    %51 = arith.mulf %45, %50 : vector<64x128xf32>
    %c0_28 = arith.constant 0 : index
    %c0_29 = arith.constant 0 : index
    %52 = vector.load %arg5[%c0_28, %c0_29] : memref<128x8xf32, #tpu.memory_space<vmem>>, vector<128x8xf32>
    %c0_30 = arith.constant 0 : index
    %c0_31 = arith.constant 0 : index
    %53 = vector.load %arg10[%c0_30, %c0_31] : memref<8x128xbf16, #tpu.memory_space<vmem>>, vector<8x128xbf16>
    %54 = arith.truncf %52 : vector<128x8xf32> to vector<128x8xbf16>
    %cst_32 = arith.constant dense<0.000000e+00> : vector<128x128xf32>
    %55 = tpu.matmul %54, %53, %cst_32 {dimension_numbers = #tpu.dot_dimension_numbers<[1], [0], [0], [1], [0, 0, 1, 1], [], []>} : vector<128x8xbf16>, vector<8x128xbf16>, vector<128x128xf32> -> vector<128x128xf32>
    %c0_33 = arith.constant 0 : index
    %c0_34 = arith.constant 0 : index
    %56 = vector.load %arg11[%c0_33, %c0_34] : memref<1x128xf32, #tpu.memory_space<vmem>>, vector<1x128xf32>
    %57 = vector.broadcast %56 : vector<1x128xf32> to vector<128x128xf32>
    %58 = arith.addf %55, %57 : vector<128x128xf32>
    %59 = arith.negf %58 : vector<128x128xf32>
    %60 = math.exp %59 : vector<128x128xf32>
    %cst_35 = arith.constant 1.000000e+00 : f32
    %61 = vector.broadcast %cst_35 : f32 to vector<128x128xf32>
    %62 = arith.addf %61, %60 : vector<128x128xf32>
    %63 = arith.divf %61, %62 : vector<128x128xf32>
    %64 = arith.mulf %58, %63 : vector<128x128xf32>
    %65 = arith.truncf %51 : vector<64x128xf32> to vector<64x128xbf16>
    %cst_36 = arith.constant dense<0.000000e+00> : vector<128x128xf32>
    %66 = tpu.matmul %7, %65, %cst_36 {dimension_numbers = #tpu.dot_dimension_numbers<[1], [0], [0], [1], [0, 0, 1, 1], [], []>} : vector<128x64xbf16>, vector<64x128xbf16>, vector<128x128xf32> -> vector<128x128xf32>
    %67 = arith.addf %66, %64 : vector<128x128xf32>
    %68 = arith.negf %67 : vector<128x128xf32>
    %69 = math.exp %68 : vector<128x128xf32>
    %cst_37 = arith.constant 1.000000e+00 : f32
    %70 = vector.broadcast %cst_37 : f32 to vector<128x128xf32>
    %71 = arith.addf %70, %69 : vector<128x128xf32>
    %72 = arith.divf %70, %71 : vector<128x128xf32>
    %73 = arith.mulf %67, %72 : vector<128x128xf32>
    %74 = arith.truncf %73 : vector<128x128xf32> to vector<128x128xbf16>
    %cst_38 = arith.constant dense<0.000000e+00> : vector<64x128xf32>
    %75 = tpu.matmul %15, %74, %cst_38 {dimension_numbers = #tpu.dot_dimension_numbers<[1], [0], [0], [1], [0, 0, 1, 1], [], []>} : vector<64x128xbf16>, vector<128x128xbf16>, vector<64x128xf32> -> vector<64x128xf32>
    %76 = arith.addf %51, %75 : vector<64x128xf32>
    %c0_39 = arith.constant 0 : index
    %c0_40 = arith.constant 0 : index
    %c0_41 = arith.constant 0 : index
    %77 = vector.load %arg12[%c0_39, %c0_40, %c0_41] : memref<2x128x128xbf16, #tpu.memory_space<vmem>>, vector<1x128x128xbf16>
    %78 = vector.shape_cast %77 : vector<1x128x128xbf16> to vector<128x128xbf16>
    %79 = arith.truncf %76 : vector<64x128xf32> to vector<64x128xbf16>
    %cst_42 = arith.constant dense<0.000000e+00> : vector<64x128xf32>
    %80 = tpu.matmul %79, %78, %cst_42 {dimension_numbers = #tpu.dot_dimension_numbers<[1], [0], [0], [1], [0, 0, 1, 1], [], []>} : vector<64x128xbf16>, vector<128x128xbf16>, vector<64x128xf32> -> vector<64x128xf32>
    %c0_43 = arith.constant 0 : index
    %c0_44 = arith.constant 0 : index
    %c0_45 = arith.constant 0 : index
    %81 = vector.load %arg13[%c0_43, %c0_44, %c0_45] : memref<2x1x128xf32, #tpu.memory_space<vmem>>, vector<1x1x128xf32>
    %82 = vector.shape_cast %81 : vector<1x1x128xf32> to vector<1x128xf32>
    %83 = vector.broadcast %82 : vector<1x128xf32> to vector<64x128xf32>
    %84 = arith.addf %80, %83 : vector<64x128xf32>
    %85 = arith.negf %84 : vector<64x128xf32>
    %86 = math.exp %85 : vector<64x128xf32>
    %cst_46 = arith.constant 1.000000e+00 : f32
    %87 = vector.broadcast %cst_46 : f32 to vector<64x128xf32>
    %88 = arith.addf %87, %86 : vector<64x128xf32>
    %89 = arith.divf %87, %88 : vector<64x128xf32>
    %90 = arith.mulf %84, %89 : vector<64x128xf32>
    %91 = arith.addf %51, %90 : vector<64x128xf32>
    %92 = arith.truncf %91 : vector<64x128xf32> to vector<64x128xbf16>
    %cst_47 = arith.constant dense<0.000000e+00> : vector<128x128xf32>
    %93 = tpu.matmul %7, %92, %cst_47 {dimension_numbers = #tpu.dot_dimension_numbers<[1], [0], [0], [1], [0, 0, 1, 1], [], []>} : vector<128x64xbf16>, vector<64x128xbf16>, vector<128x128xf32> -> vector<128x128xf32>
    %94 = arith.addf %93, %64 : vector<128x128xf32>
    %95 = arith.negf %94 : vector<128x128xf32>
    %96 = math.exp %95 : vector<128x128xf32>
    %cst_48 = arith.constant 1.000000e+00 : f32
    %97 = vector.broadcast %cst_48 : f32 to vector<128x128xf32>
    %98 = arith.addf %97, %96 : vector<128x128xf32>
    %99 = arith.divf %97, %98 : vector<128x128xf32>
    %100 = arith.mulf %94, %99 : vector<128x128xf32>
    %101 = arith.truncf %100 : vector<128x128xf32> to vector<128x128xbf16>
    %cst_49 = arith.constant dense<0.000000e+00> : vector<64x128xf32>
    %102 = tpu.matmul %15, %101, %cst_49 {dimension_numbers = #tpu.dot_dimension_numbers<[1], [0], [0], [1], [0, 0, 1, 1], [], []>} : vector<64x128xbf16>, vector<128x128xbf16>, vector<64x128xf32> -> vector<64x128xf32>
    %103 = arith.addf %91, %102 : vector<64x128xf32>
    %c1 = arith.constant 1 : index
    %c0_50 = arith.constant 0 : index
    %c0_51 = arith.constant 0 : index
    %104 = vector.load %arg12[%c1, %c0_50, %c0_51] : memref<2x128x128xbf16, #tpu.memory_space<vmem>>, vector<1x128x128xbf16>
    %105 = vector.shape_cast %104 : vector<1x128x128xbf16> to vector<128x128xbf16>
    %106 = arith.truncf %103 : vector<64x128xf32> to vector<64x128xbf16>
    %cst_52 = arith.constant dense<0.000000e+00> : vector<64x128xf32>
    %107 = tpu.matmul %106, %105, %cst_52 {dimension_numbers = #tpu.dot_dimension_numbers<[1], [0], [0], [1], [0, 0, 1, 1], [], []>} : vector<64x128xbf16>, vector<128x128xbf16>, vector<64x128xf32> -> vector<64x128xf32>
    %c1_53 = arith.constant 1 : index
    %c0_54 = arith.constant 0 : index
    %c0_55 = arith.constant 0 : index
    %108 = vector.load %arg13[%c1_53, %c0_54, %c0_55] : memref<2x1x128xf32, #tpu.memory_space<vmem>>, vector<1x1x128xf32>
    %109 = vector.shape_cast %108 : vector<1x1x128xf32> to vector<1x128xf32>
    %110 = vector.broadcast %109 : vector<1x128xf32> to vector<64x128xf32>
    %111 = arith.addf %107, %110 : vector<64x128xf32>
    %112 = arith.negf %111 : vector<64x128xf32>
    %113 = math.exp %112 : vector<64x128xf32>
    %cst_56 = arith.constant 1.000000e+00 : f32
    %114 = vector.broadcast %cst_56 : f32 to vector<64x128xf32>
    %115 = arith.addf %114, %113 : vector<64x128xf32>
    %116 = arith.divf %114, %115 : vector<64x128xf32>
    %117 = arith.mulf %111, %116 : vector<64x128xf32>
    %118 = arith.addf %91, %117 : vector<64x128xf32>
    %c0_57 = arith.constant 0 : index
    %c0_58 = arith.constant 0 : index
    %119 = vector.load %arg14[%c0_57, %c0_58] : memref<128x128xbf16, #tpu.memory_space<vmem>>, vector<128x128xbf16>
    %120 = arith.truncf %118 : vector<64x128xf32> to vector<64x128xbf16>
    %cst_59 = arith.constant dense<0.000000e+00> : vector<64x128xf32>
    %121 = tpu.matmul %120, %119, %cst_59 {dimension_numbers = #tpu.dot_dimension_numbers<[1], [0], [0], [1], [0, 0, 1, 1], [], []>} : vector<64x128xbf16>, vector<128x128xbf16>, vector<64x128xf32> -> vector<64x128xf32>
    %c0_60 = arith.constant 0 : index
    %c0_61 = arith.constant 0 : index
    %122 = vector.load %arg15[%c0_60, %c0_61] : memref<16x128xbf16, #tpu.memory_space<vmem>>, vector<16x128xbf16>
    %123 = arith.truncf %32 : vector<64x16xf32> to vector<64x16xbf16>
    %cst_62 = arith.constant dense<0.000000e+00> : vector<64x128xf32>
    %124 = tpu.matmul %123, %122, %cst_62 {dimension_numbers = #tpu.dot_dimension_numbers<[1], [0], [0], [1], [0, 0, 1, 1], [], []>} : vector<64x16xbf16>, vector<16x128xbf16>, vector<64x128xf32> -> vector<64x128xf32>
    %125 = arith.addf %121, %124 : vector<64x128xf32>
    %c0_63 = arith.constant 0 : index
    %c0_64 = arith.constant 0 : index
    %126 = vector.load %arg16[%c0_63, %c0_64] : memref<1x128xf32, #tpu.memory_space<vmem>>, vector<1x128xf32>
    %127 = vector.broadcast %126 : vector<1x128xf32> to vector<64x128xf32>
    %128 = arith.addf %125, %127 : vector<64x128xf32>
    %129 = arith.negf %128 : vector<64x128xf32>
    %130 = math.exp %129 : vector<64x128xf32>
    %cst_65 = arith.constant 1.000000e+00 : f32
    %131 = vector.broadcast %cst_65 : f32 to vector<64x128xf32>
    %132 = arith.addf %131, %130 : vector<64x128xf32>
    %133 = arith.divf %131, %132 : vector<64x128xf32>
    %134 = arith.mulf %128, %133 : vector<64x128xf32>
    %c0_66 = arith.constant 0 : index
    %c0_67 = arith.constant 0 : index
    %135 = vector.load %arg22[%c0_66, %c0_67] : memref<64x128xf32, #tpu.memory_space<vmem>>, vector<64x128xf32>
    tpu.vector_store %arg22[%c0_66, %c0_67], %134 {strides = array<i32>} : memref<64x128xf32, #tpu.memory_space<vmem>>, vector<64x128xf32>,
    %c0_68 = arith.constant 0 : index
    %c0_69 = arith.constant 0 : index
    %136 = vector.load %arg17[%c0_68, %c0_69] : memref<128x128xbf16, #tpu.memory_space<vmem>>, vector<128x128xbf16>
    %137 = arith.truncf %134 : vector<64x128xf32> to vector<64x128xbf16>
    %cst_70 = arith.constant dense<0.000000e+00> : vector<64x128xf32>
    %138 = tpu.matmul %137, %136, %cst_70 {dimension_numbers = #tpu.dot_dimension_numbers<[1], [0], [0], [1], [0, 0, 1, 1], [], []>} : vector<64x128xbf16>, vector<128x128xbf16>, vector<64x128xf32> -> vector<64x128xf32>
    %c0_71 = arith.constant 0 : index
    %c0_72 = arith.constant 0 : index
    %139 = vector.load %arg18[%c0_71, %c0_72] : memref<1x128xf32, #tpu.memory_space<vmem>>, vector<1x128xf32>
    %140 = vector.broadcast %139 : vector<1x128xf32> to vector<64x128xf32>
    %141 = arith.addf %138, %140 : vector<64x128xf32>
    %142 = arith.negf %141 : vector<64x128xf32>
    %143 = math.exp %142 : vector<64x128xf32>
    %cst_73 = arith.constant 1.000000e+00 : f32
    %144 = vector.broadcast %cst_73 : f32 to vector<64x128xf32>
    %145 = arith.addf %144, %143 : vector<64x128xf32>
    %146 = arith.divf %144, %145 : vector<64x128xf32>
    %147 = arith.mulf %141, %146 : vector<64x128xf32>
    %148 = arith.truncf %147 : vector<64x128xf32> to vector<64x128xbf16>
    %cst_74 = arith.constant dense<0.000000e+00> : vector<4x128xf32>
    %149 = tpu.matmul %23, %148, %cst_74 {dimension_numbers = #tpu.dot_dimension_numbers<[1], [0], [0], [1], [0, 0, 1, 1], [], []>} : vector<4x64xbf16>, vector<64x128xbf16>, vector<4x128xf32> -> vector<4x128xf32>
    %c0_75 = arith.constant 0 : index
    %c0_76 = arith.constant 0 : index
    %150 = vector.load %arg19[%c0_75, %c0_76] : memref<128x128xbf16, #tpu.memory_space<vmem>>, vector<128x128xbf16>
    %151 = arith.truncf %149 : vector<4x128xf32> to vector<4x128xbf16>
    %cst_77 = arith.constant dense<0.000000e+00> : vector<4x128xf32>
    %152 = tpu.matmul %151, %150, %cst_77 {dimension_numbers = #tpu.dot_dimension_numbers<[1], [0], [0], [1], [0, 0, 1, 1], [], []>} : vector<4x128xbf16>, vector<128x128xbf16>, vector<4x128xf32> -> vector<4x128xf32>
    %c0_78 = arith.constant 0 : index
    %c0_79 = arith.constant 0 : index
    %153 = vector.load %arg20[%c0_78, %c0_79] : memref<8x128xbf16, #tpu.memory_space<vmem>>, vector<8x128xbf16>
    %154 = arith.truncf %33 : vector<4x8xf32> to vector<4x8xbf16>
    %cst_80 = arith.constant dense<0.000000e+00> : vector<4x128xf32>
    %155 = tpu.matmul %154, %153, %cst_80 {dimension_numbers = #tpu.dot_dimension_numbers<[1], [0], [0], [1], [0, 0, 1, 1], [], []>} : vector<4x8xbf16>, vector<8x128xbf16>, vector<4x128xf32> -> vector<4x128xf32>
    %156 = arith.addf %152, %155 : vector<4x128xf32>
    %c0_81 = arith.constant 0 : index
    %c0_82 = arith.constant 0 : index
    %157 = vector.load %arg21[%c0_81, %c0_82] : memref<1x128xf32, #tpu.memory_space<vmem>>, vector<1x128xf32>
    %158 = vector.broadcast %157 : vector<1x128xf32> to vector<4x128xf32>
    %159 = arith.addf %156, %158 : vector<4x128xf32>
    %160 = arith.negf %159 : vector<4x128xf32>
    %161 = math.exp %160 : vector<4x128xf32>
    %cst_83 = arith.constant 1.000000e+00 : f32
    %162 = vector.broadcast %cst_83 : f32 to vector<4x128xf32>
    %163 = arith.addf %162, %161 : vector<4x128xf32>
    %164 = arith.divf %162, %163 : vector<4x128xf32>
    %165 = arith.mulf %159, %164 : vector<4x128xf32>
    %c0_84 = arith.constant 0 : index
    %c0_85 = arith.constant 0 : index
    %166 = vector.load %arg23[%c0_84, %c0_85] : memref<4x128xf32, #tpu.memory_space<vmem>>, vector<4x128xf32>
    tpu.vector_store %arg23[%c0_84, %c0_85], %165 {strides = array<i32>} : memref<4x128xf32, #tpu.memory_space<vmem>>, vector<4x128xf32>,
    return
  }
}

</mosaic_0001>

<bundles_post_ra>
// kernel: graph_embedding_forward.1
= control target key start
LH: loop header
LB: loop body
LE: loop exit
PB: predicated region body
PF: predicated region fallthrough
CT: control target
= control target key end

     0   :  { %s4779_s0 = inlined_call_operand.vmem [shape: s32[128,1], index: 0, kind: input, shape index: {}]   ;;  %s4780_s1 = inlined_call_operand.vmem [shape: s32[1,128], index: 1, kind: input, shape index: {}]   ;;  %s4781_s2 = inlined_call_operand.vmem [shape: s32[1,64], index: 2, kind: input, shape index: {}]   ;;  %s4782_s3 = inlined_call_operand.vmem [shape: s32[64,1], index: 3, kind: input, shape index: {}]   ;;  %s4783_s4 = inlined_call_operand.vmem [shape: f32[64,16], index: 4, kind: input, shape index: {}]   ;;  %s4784_s5 = inlined_call_operand.vmem [shape: f32[128,8], index: 5, kind: input, shape index: {}]   ;;  %s4785_s6 = inlined_call_operand.vmem [shape: f32[4,8], index: 6, kind: input, shape index: {}]   ;;  %s4786_s7 = inlined_call_operand.vmem [shape: bf16[16,128], index: 7, kind: input, shape index: {}]   ;;  %s4787_s8 = inlined_call_operand.vmem [shape: bf16[8,128], index: 8, kind: input, shape index: {}]   ;;  %s4788_s9 = inlined_call_operand.vmem [shape: f32[1,128], index: 9, kind: input, shape index: {}]   ;;  %s4789_s10 = inlined_call_operand.vmem [shape: bf16[8,128], index: 10, kind: input, shape index: {}]   ;;  %s4790_s11 = inlined_call_operand.vmem [shape: f32[1,128], index: 11, kind: input, shape index: {}]   ;;  %s4791_s12 = inlined_call_operand.vmem [shape: bf16[2,128,128], index: 12, kind: input, shape index: {}]   ;;  %s4792_s13 = inlined_call_operand.vmem [shape: f32[2,1,128], index: 13, kind: input, shape index: {}]   ;;  %s4793_s14 = inlined_call_operand.vmem [shape: bf16[128,128], index: 14, kind: input, shape index: {}]   ;;  %s4794_s15 = inlined_call_operand.vmem [shape: bf16[16,128], index: 15, kind: input, shape index: {}]   ;;  %s4795_s16 = inlined_call_operand.vmem [shape: f32[1,128], index: 16, kind: input, shape index: {}]   ;;  %s4796_s17 = inlined_call_operand.vmem [shape: bf16[128,128], index: 17, kind: input, shape index: {}]   ;;  %s4797_s18 = inlined_call_operand.vmem [shape: f32[1,128], index: 18, kind: input, shape index: {}]   ;;  %s4798_s19 = inlined_call_operand.vmem [shape: bf16[128,128], index: 19, kind: input, shape index: {}]   ;;  %s4799_s20 = inlined_call_operand.vmem [shape: bf16[8,128], index: 20, kind: input, shape index: {}]   ;;  %s4800_s21 = inlined_call_operand.vmem [shape: f32[1,128], index: 21, kind: input, shape index: {}]   ;;  %s4801_s22 = inlined_call_operand.hbm [shape: f32[64,128], index: 22, kind: output, shape index: {0}]   ;;  %s4802_s23 = inlined_call_operand.hbm [shape: f32[4,128], index: 23, kind: output, shape index: {1}]  }
   0x1   :  { %4823 = sst [smem:[#allocation20_spill]] %s4779_s0 }
   0x2   :  { %4824 = sst [smem:[#allocation21_spill]] %s4780_s1 }
   0x3   :  { %4825 = sst [smem:[#allocation22_spill]] %s4781_s2 }
   0x4   :  { %4826 = sst [smem:[#allocation23_spill]] %s4782_s3 }
   0x5   :  { %4827 = sst [smem:[#allocation24_spill]] %s4783_s4 }
   0x6   :  { %4828 = sst [smem:[#allocation25_spill]] %s4784_s5 }
   0x7   :  { %4829 = sst [smem:[#allocation26_spill]] %s4785_s6 }
   0x8   :  { %4830 = sst [smem:[#allocation27_spill]] %s4786_s7 }
   0x9   :  { %29 = vsyncpa [#allocation3], 0  ;;  %v285_v0 = vld [vmem:[%s4787_s8] sm:$0xf]  ;;  %vm291_vm0 = vcmask 1043456   ;;  %v4807_v1 = vmov 0.0  }
   0xa   :  { %2943 = vmatprep.subr.bf16.mxu0 %v4807_v1  ;;  %v293_v2 = vsel %vm291_vm0, %v285_v0, 0  ;;  %vm3702_vm1 = vmmov 0   ;;  %s4831_s5 = sld [smem:[#allocation26_spill]]  ;;  %s4832_s2 = sld [smem:[#allocation23_spill]]  ;;  %vm287_vm2 = vcmask 64512   ;;  %v3703_v7 = vmov 0  }
   0xb   :  { %2945 = vmatprep.mubr.msk.bf16.mxu0 %vm3702_vm1, %v4807_v1  ;;  %2944 = vmatpush3.bf16.msra.mxu0 %v293_v2  ;;  %s4834_s8 = sld [smem:[#allocation20_spill]] }
   0xc   :  { %3254 = vset.pattern.permute.xlu1 %v3703_v7  ;;  %3253 = vset.pattern.permute.xlu0 %v3703_v7 }
  0x10   :  { %v284_v3 = vld [vmem:[%s4831_s5] sm:$0xf]  ;;  %v226_v4 = vld [vmem:[%s4832_s2 + $0x10] sm:$0xff]  ;;  %v227_v8 = vld [vmem:[%s4832_s2 + $0x18] sm:$0xff] }
  0x11   :  { %v224_v5 = vld [vmem:[%s4832_s2] sm:$0xff]  ;;  %v3845_v6 = vpack.c.bf16 %v284_v3, %v284_v3  ;;  %239 = vperm.xlu1 %3254, %v226_v4   ;;  %v225_v9 = vld [vmem:[%s4832_s2 + $0x8] sm:$0xff]  ;;  %v231_v12 = vld [vmem:[%s4832_s2 + $0x38] sm:$0xff] }
  0x12   :  { %233 = vperm.xlu0 %3253, %v224_v5   ;;  %v229_v10 = vld [vmem:[%s4832_s2 + $0x28] sm:$0xff]  ;;  %v228_v11 = vld [vmem:[%s4832_s2 + $0x20] sm:$0xff]  ;;  %v230_v13 = vld [vmem:[%s4832_s2 + $0x30] sm:$0xff] }
  0x13   :  { %4833 = vst [vmem:[#allocation8_spill] sm:$0xff] %v3845_v6  ;;  %2946 = vmatmul.mubr.msk.bf16.vlgmr.msra.gmra.mrb[0].mxu0 %vm287_vm2, %v3845_v6  ;;  %v77_v14 = vld [vmem:[%s4834_s8 + $0x8] sm:$0xff]  ;;  %v76_v15 = vld [vmem:[%s4834_s8] sm:$0xff]  ;;  %v79_v16 = vld [vmem:[%s4834_s8 + $0x18] sm:$0xff] }
  0x14   :  { %v78_v17 = vld [vmem:[%s4834_s8 + $0x10] sm:$0xff]  ;;  %v81_v18 = vld [vmem:[%s4834_s8 + $0x28] sm:$0xff]  ;;  %v80_v19 = vld [vmem:[%s4834_s8 + $0x20] sm:$0xff] }
  0x15   :  { %242 = vperm.xlu1 %3254, %v227_v8   ;;  %v83_v20 = vld [vmem:[%s4834_s8 + $0x38] sm:$0xff]  ;;  %v82_v21 = vld [vmem:[%s4834_s8 + $0x30] sm:$0xff]  ;;  %v85_v22 = vld [vmem:[%s4834_s8 + $0x48] sm:$0xff] }
  0x16   :  { %236 = vperm.xlu0 %3253, %v225_v9   ;;  %v84_v23 = vld [vmem:[%s4834_s8 + $0x40] sm:$0xff]  ;;  %v87_v24 = vld [vmem:[%s4834_s8 + $0x58] sm:$0xff]  ;;  %v86_v25 = vld [vmem:[%s4834_s8 + $0x50] sm:$0xff] }
  0x19   :  { %248 = vperm.xlu1 %3254, %v229_v10  }
  0x1a   :  { %245 = vperm.xlu0 %3253, %v228_v11  }
  0x1d   :  { %254 = vperm.xlu1 %3254, %v231_v12  }
  0x1e   :  { %251 = vperm.xlu0 %3253, %v230_v13  }
  0x21   :  { %98 = vperm.xlu1 %3254, %v77_v14  }
  0x22   :  { %95 = vperm.xlu0 %3253, %v76_v15  }
  0x25   :  { %104 = vperm.xlu1 %3254, %v79_v16  }
  0x26   :  { %101 = vperm.xlu0 %3253, %v78_v17  }
  0x29   :  { %110 = vperm.xlu1 %3254, %v81_v18  }
  0x2a   :  { %107 = vperm.xlu0 %3253, %v80_v19  }
  0x2d   :  { %116 = vperm.xlu1 %3254, %v83_v20  }
  0x2e   :  { %113 = vperm.xlu0 %3253, %v82_v21  }
  0x31   :  { %122 = vperm.xlu1 %3254, %v85_v22  }
  0x32   :  { %119 = vperm.xlu0 %3253, %v84_v23  }
  0x33   :  { %30 = vsyncpa [#allocation5], 0  ;;  %v89_v26 = vld [vmem:[%s4834_s8 + $0x68] sm:$0xff]  ;;  %v88_v27 = vld [vmem:[%s4834_s8 + $0x60] sm:$0xff]  ;;  %s4835_s3 = sld [smem:[#allocation25_spill]]  ;;  %v92_v38 = vlaneseq  ;;  %vm336_vm5 = vcmask 31744  }
  0x34   :  { %v91_v28 = vld [vmem:[%s4834_s8 + $0x78] sm:$0xff]  ;;  %v90_v29 = vld [vmem:[%s4834_s8 + $0x70] sm:$0xff]  ;;  %v595_v30 = vld [vmem:[%s4789_s10] sm:$0xf]  ;;  %vm349_vm10 = vcmask 1041408   ;;  %s4836_s5 = sld [smem:[#allocation27_spill]] }
  0x35   :  { %128 = vperm.xlu1 %3254, %v87_v24   ;;  %3244 = vmatprep.subr.msk.bf16.mxu0 %vm291_vm0, %v595_v30  ;;  %v636_v33 = vsel %vm291_vm0, %v595_v30, 0  ;;  %v3935_v39 = vand.u32 127, %v92_v38  ;;  %s4837_s6 = sld [smem:[#allocation24_spill]]  ;;  %vm430_vm13 = vcmask 130048   ;;  %s4842_s30 = sld [smem:[#allocation21_spill]] }
  0x36   :  { %125 = vperm.xlu0 %3253, %v86_v25   ;;  %2970 = vmatpush3.bf16.msra.mxu0 %v636_v33 }
  0x39   :  { %134 = vperm.xlu1 %3254, %v89_v26   ;;  %v579_v31 = vld [vmem:[%s4835_s3] sm:$0xff]  ;;  %v580_v32 = vld [vmem:[%s4835_s3 + $0x8] sm:$0xff]  ;;  %v581_v35 = vld [vmem:[%s4835_s3 + $0x10] sm:$0xff] }
  0x3a   :  { %131 = vperm.xlu0 %3253, %v88_v27   ;;  %v596_v34 = vpack.c.bf16 %v580_v32, %v579_v31  ;;  %v582_v36 = vld [vmem:[%s4835_s3 + $0x18] sm:$0xff]  ;;  %v3255_v52 = vld [vmem:[%s4836_s5] sm:$0xff]   ;;  %v584_v23 = vld [vmem:[%s4835_s3 + $0x28] sm:$0xff]  ;;  %s4871_s5 = sld [smem:[#allocation22_spill]] }
  0x3b   :  { %v597_v37 = vpack.c.bf16 %v582_v36, %v581_v35  ;;  %v276_v0 = vld [vmem:[%s4837_s6] sm:$0xff]  ;;  %v277_v2 = vld [vmem:[%s4837_s6 + $0x8] sm:$0xff]  ;;  %v278_v8 = vld [vmem:[%s4837_s6 + $0x10] sm:$0xff] }
  0x3c   :  { %2971 = vmatprep.mubr.msk.bf16.mxu0 %vm287_vm2, %v596_v34  ;;  %v3965_v5 = vpack.c.bf16 %v277_v2, %v276_v0  ;;  %v279_v9 = vld [vmem:[%s4837_s6 + $0x18] sm:$0xff]  ;;  %v280_v10 = vld [vmem:[%s4837_s6 + $0x20] sm:$0xff]  ;;  %v281_v11 = vld [vmem:[%s4837_s6 + $0x28] sm:$0xff] }
  0x3d   :  { %140 = vperm.xlu1 %3254, %v91_v28   ;;  %2972 = vmatmul.mubr.msk.bf16.vlgmr.msra.gmra.mrb[4].mxu0 %vm287_vm2, %v597_v37  ;;  %v3982_v12 = vpack.c.bf16 %v279_v9, %v278_v8  ;;  %v3984_v13 = vpack.c.bf16 %v281_v11, %v280_v10  ;;  %v282_v16 = vld [vmem:[%s4837_s6 + $0x30] sm:$0xff]  ;;  %v283_v17 = vld [vmem:[%s4837_s6 + $0x38] sm:$0xff]  ;;  %v583_v22 = vld [vmem:[%s4835_s3 + $0x20] sm:$0xff] }
  0x3e   :  { %137 = vperm.xlu0 %3253, %v90_v29   ;;  %4838 = vst [vmem:[#allocation9_spill] sm:$0xff] %v3965_v5  ;;  %v4000_v20 = vpack.c.bf16 %v283_v17, %v282_v16  ;;  %v598_v24 = vpack.c.bf16 %v584_v23, %v583_v22  ;;  %v585_v25 = vld [vmem:[%s4835_s3 + $0x30] sm:$0xff]  ;;  %v586_v26 = vld [vmem:[%s4835_s3 + $0x38] sm:$0xff]  ;;  %v587_v28 = vld [vmem:[%s4835_s3 + $0x40] sm:$0xff] }
  0x3f   :  { %4839 = vst [vmem:[#allocation10_spill] sm:$0xff] %v3982_v12  ;;  %4840 = vst [vmem:[#allocation11_spill] sm:$0xff] %v3984_v13  ;;  %v599_v27 = vpack.c.bf16 %v586_v26, %v585_v25  ;;  %v588_v29 = vld [vmem:[%s4835_s3 + $0x48] sm:$0xff]  ;;  %v589_v31 = vld [vmem:[%s4835_s3 + $0x50] sm:$0xff] }
  0x40   :  { %4841 = vst [vmem:[#allocation12_spill] sm:$0xff] %v4000_v20  ;;  %2975 = vmatprep.mubr.msk.bf16.mxu0 %vm287_vm2, %v598_v24  ;;  %v600_v30 = vpack.c.bf16 %v588_v29, %v587_v28  ;;  %v590_v32 = vld [vmem:[%s4835_s3 + $0x58] sm:$0xff]  ;;  %v591_v34 = vld [vmem:[%s4835_s3 + $0x60] sm:$0xff]  ;;  %v592_v35 = vld [vmem:[%s4835_s3 + $0x68] sm:$0xff] }
  0x41   :  { %v601_v33 = vpack.c.bf16 %v590_v32, %v589_v31  ;;  %v602_v36 = vpack.c.bf16 %v592_v35, %v591_v34  ;;  %v593_v37 = vld [vmem:[%s4835_s3 + $0x70] sm:$0xff] }
  0x45   :  { %2976 = vmatmul.mubr.msk.bf16.gmra.mrb[8].mxu0 %vm287_vm2, %v599_v27 }
  0x46   :  { %2979 = vmatprep.mubr.msk.bf16.mxu0 %vm287_vm2, %v600_v30 }
  0x4d   :  { %2980 = vmatmul.mubr.msk.bf16.gmra.mrb[12].mxu0 %vm287_vm2, %v601_v33 }
  0x4e   :  { %2983 = vmatprep.mubr.msk.bf16.mxu0 %vm287_vm2, %v602_v36 }
  0x90   :  { %v240_v45 = vpop.permute.xlu1 %239 }
  0x91   :  { %v234_v40 = vpop.permute.xlu0 %233  ;;  %vm258_vm6 = vcmp.eq.s32.totalorder %v3935_v39, %v240_v45 }
  0x92   :  { %vm256_vm3 = vcmp.eq.s32.totalorder %v3935_v39, %v234_v40  ;;  %v266_v53 = vsel %vm258_vm6, 1.0, %v4807_v1  ;;  %v594_v40 = vld [vmem:[%s4835_s3 + $0x78] sm:$0xff] }
  0x93   :  { %v264_v41 = vsel %vm256_vm3, 1.0, %v4807_v1  ;;  %vm851_vm3 = vcmask 523264  }
  0x94   :  { %v243_v46 = vpop.permute.xlu1 %242 }
  0x95   :  { %v237_v42 = vpop.permute.xlu0 %236  ;;  %vm259_vm7 = vcmp.eq.s32.totalorder %v3935_v39, %v243_v46  ;;  %v2605_v46 = vld [vmem:[%s4788_s9] ss:$0 sm:$0xff] }
  0x96   :  { %vm257_vm4 = vcmp.eq.s32.totalorder %v3935_v39, %v237_v42  ;;  %v267_v54 = vsel %vm259_vm7, 1.0, %v4807_v1 }
  0x97   :  { %v265_v43 = vsel %vm257_vm4, 1.0, %v4807_v1  ;;  %v273_v60 = vpack.c.bf16 %v267_v54, %v266_v53 }
  0x98   :  { %v272_v44 = vpack.c.bf16 %v265_v43, %v264_v41  ;;  %v249_v47 = vpop.permute.xlu1 %248  ;;  %v603_v41 = vpack.c.bf16 %v594_v40, %v593_v37 }
  0x99   :  { %v246_v48 = vpop.permute.xlu0 %245  ;;  %vm261_vm8 = vcmp.eq.s32.totalorder %v3935_v39, %v249_v47 }
  0x9a   :  { %2951 = vmatprep.mubr.msk.bf16.mxu1 %vm336_vm5, %v272_v44  ;;  %vm260_vm9 = vcmp.eq.s32.totalorder %v3935_v39, %v246_v48  ;;  %v269_v56 = vsel %vm261_vm8, 1.0, %v4807_v1  ;;  %2984 = vmatmul.mubr.msk.bf16.gmra.mrb[16].mxu0 %vm287_vm2, %v603_v41 }
  0x9b   :  { %v268_v57 = vsel %vm260_vm9, 1.0, %v4807_v1 }
  0x9c   :  { %v274_v61 = vpack.c.bf16 %v269_v56, %v268_v57  ;;  %v255_v62 = vpop.permute.xlu1 %254 }
  0x9d   :  { %v252_v63 = vpop.permute.xlu0 %251  ;;  %vm263_vm11 = vcmp.eq.s32.totalorder %v3935_v39, %v255_v62 }
  0x9e   :  { %vm262_vm12 = vcmp.eq.s32.totalorder %v3935_v39, %v252_v63  ;;  %v271_v3 = vsel %vm263_vm11, 1.0, %v4807_v1 }
  0x9f   :  { %v270_v4 = vsel %vm262_vm12, 1.0, %v4807_v1 }
  0xa0   :  { %v275_v7 = vpack.c.bf16 %v271_v3, %v270_v4  ;;  %v99_v14 = vpop.permute.xlu1 %98 }
  0xa1   :  { %v96_v15 = vpop.permute.xlu0 %95  ;;  %vm143_vm14 = vcmp.eq.s32.totalorder %v3935_v39, %v99_v14 }
  0xa2   :  { %vm142_vm15 = vcmp.eq.s32.totalorder %v3935_v39, %v96_v15  ;;  %v159_v18 = vsel %vm143_vm14, 1.0, %v4807_v1 }
  0xa3   :  { %v158_v19 = vsel %vm142_vm15, 1.0, %v4807_v1 }
  0xa4   :  { %v4002_v21 = vpack.c.bf16 %v159_v18, %v158_v19  ;;  %v105_v32 = vpop.permute.xlu1 %104 }
  0xa5   :  { %v102_v33 = vpop.permute.xlu0 %101  ;;  %vm145_vm4 = vcmp.eq.s32.totalorder %v3935_v39, %v105_v32 }
  0xe6   :  { %v329_v49 = vpop.f32.mrb[0].mxu0 }
  0xe7   :  { %v335_v50 = vpack.c.bf16 %v329_v49, %v329_v49  ;;  %v2947_v51 = vpop.f32.mrb[1].mxu0 }
  0xe8   :  { %v332_v55 = vpop.f32.mrb[2].mxu0 }
  0xe9   :  { %v2948_v58 = vpop.f32.mrb[3].mxu0  ;;  %3243 = vmatprep.subr.msk.bf16.mxu1 %vm349_vm10, %v335_v50  ;;  %v351_v59 = vsel %vm349_vm10, %v335_v50, 0 }
  0xea   :  { %2950 = vmatpush3.bf16.msra.mxu1 %v351_v59 }
  0xeb   :  { %2959 = vmatprep.subr.bf16.mxu1 %v3255_v52 }
  0xed   :  { %2952 = vmatmul.mubr.msk.bf16.vlgmr.msra.gmra.mrb[0].mxu1 %vm336_vm5, %v273_v60 }
  0xee   :  { %2955 = vmatprep.mubr.msk.bf16.mxu1 %vm336_vm5, %v274_v61  ;;  %2960 = vmatpush3.bf16.msra.mxu1 %v3255_v52 }
  0xf5   :  { %2956 = vmatmul.mubr.msk.bf16.gmra.mrb[4].mxu1 %vm336_vm5, %v275_v7  ;;  %vm144_vm5 = vcmp.eq.s32.totalorder %v3935_v39, %v102_v33 }
  0xf6   :  { %2961 = vmatprep.mubr.msk.bf16.mxu1 %vm430_vm13, %v3965_v5 }
  0xfd   :  { %2962 = vmatmul.mubr.msk.bf16.vlgmr.msra.gmra.mrb[0].mxu1 %vm430_vm13, %v3982_v12 }
  0xfe   :  { %2965 = vmatprep.mubr.msk.bf16.mxu1 %vm430_vm13, %v3984_v13 }
 0x105   :  { %2966 = vmatmul.mubr.msk.bf16.gmra.mrb[4].mxu1 %vm430_vm13, %v4000_v20 }
 0x106   :  { %2995 = vmatprep.mubr.msk.bf16.mxu1 %vm851_vm3, %v4002_v21 }
 0x110   :  { %v4050_v42 = vpop.f32.mrb[4].mxu0 }
 0x111   :  { %v4052_v43 = vpop.f32.mrb[5].mxu0 }
 0x112   :  { %v4054_v44 = vpop.f32.mrb[6].mxu0 }
 0x113   :  { %v4056_v45 = vpop.f32.mrb[7].mxu0 }
 0x1d0   :  { %v2963_v47 = vpop.f32.mrb[0].mxu1 }
 0x1d1   :  { %v4061_v48 = vadd.f32 %v2963_v47, %v2605_v46  ;;  %v477_v49 = vpop.f32.mrb[1].mxu1  ;;  %v111_v47 = vpop.permute.xlu1 %110 }
 0x1d2   :  { %v515_v50 = vadd.f32 %v2605_v46, %v477_v49  ;;  %v2964_v51 = vpop.f32.mrb[2].mxu1  ;;  %v108_v49 = vpop.permute.xlu0 %107  ;;  %vm147_vm6 = vcmp.eq.s32.totalorder %v3935_v39, %v111_v47 }
 0x1d3   :  { %v2608_v52 = vmul.f32 -1.442695, %v4061_v48  ;;  %v518_v53 = vadd.f32 %v2964_v51, %v2605_v46  ;;  %v480_v54 = vpop.f32.mrb[3].mxu1  ;;  %vm146_vm7 = vcmp.eq.s32.totalorder %v3935_v39, %v108_v49 }
 0x1d4   :  { %v2606_v55 = vmul.f32 -1.442695, %v515_v50  ;;  %v516_v56 = vadd.f32 %v2605_v46, %v480_v54 }
 0x1d5   :  { %3297 = vpow2.f32 %v2608_v52  ;;  %v2609_v57 = vmul.f32 -1.442695, %v518_v53 }
 0x1d6   :  { %3299 = vpow2.f32 %v2606_v55  ;;  %v2607_v58 = vmul.f32 -1.442695, %v516_v56 }
 0x1d7   :  { %3301 = vpow2.f32 %v2609_v57  ;;  %v117_v57 = vpop.permute.xlu1 %116 }
 0x1d8   :  { %3303 = vpow2.f32 %v2607_v58  ;;  %v2967_v59 = vpop.f32.mrb[4].mxu1  ;;  %v114_v58 = vpop.permute.xlu0 %113  ;;  %vm149_vm8 = vcmp.eq.s32.totalorder %v3935_v39, %v117_v57 }
 0x1d9   :  { %v4064_v60 = vadd.f32 %v2967_v59, %v2605_v46  ;;  %v493_v61 = vpop.f32.mrb[5].mxu1  ;;  %vm148_vm9 = vcmp.eq.s32.totalorder %v3935_v39, %v114_v58  ;;  %v4158_v58 = vshrl.u32 %v92_v38, 7  ;;  %v3256_v38 = vld [vmem:[%s4791_s12] sm:$0xff]  }
 0x1da   :  { %v519_v62 = vadd.f32 %v2605_v46, %v493_v61  ;;  %v2968_v63 = vpop.f32.mrb[6].mxu1 }
 0x1db   :  { %v2612_v0 = vmul.f32 -1.442695, %v4064_v60  ;;  %v522_v2 = vadd.f32 %v2968_v63, %v2605_v46  ;;  %v496_v3 = vpop.f32.mrb[7].mxu1  ;;  %v160_v63 = vsel %vm144_vm5, 1.0, %v4807_v1 }
 0x1dc   :  { %v2610_v4 = vmul.f32 -1.442695, %v519_v62  ;;  %v520_v7 = vadd.f32 %v2605_v46, %v496_v3  ;;  %v163_v3 = vsel %vm147_vm6, 1.0, %v4807_v1 }
 0x1dd   :  { %3305 = vpow2.f32 %v2612_v0  ;;  %v2613_v8 = vmul.f32 -1.442695, %v522_v2  ;;  %v123_v0 = vpop.permute.xlu1 %122 }
 0x1de   :  { %3307 = vpow2.f32 %v2610_v4  ;;  %v2611_v9 = vmul.f32 -1.442695, %v520_v7  ;;  %v162_v4 = vsel %vm146_vm7, 1.0, %v4807_v1  ;;  %vm151_vm10 = vcmp.eq.s32.totalorder %v3935_v39, %v123_v0  ;;  %v3257_v0 = vld [vmem:[%s4791_s12 + $0x8] sm:$0xff]  }
 0x1df   :  { %v3298_v10 = vpop.eup %3297  ;;  %3309 = vpow2.f32 %v2613_v8  ;;  %v4103_v8 = vpack.c.bf16 %v163_v3, %v162_v4  ;;  %v3258_v3 = vld [vmem:[%s4791_s12 + $0x10] sm:$0xff]  }
 0x1e0   :  { %v3300_v11 = vpop.eup %3299  ;;  %v549_v14 = vadd.f32 1.0, %v3298_v10  ;;  %3311 = vpow2.f32 %v2611_v9 }
 0x1e1   :  { %v3302_v15 = vpop.eup %3301  ;;  %v547_v16 = vadd.f32 1.0, %v3300_v11  ;;  %v129_v9 = vpop.permute.xlu1 %128  ;;  %v165_v11 = vsel %vm149_vm8, 1.0, %v4807_v1 }
 0x1e2   :  { %v3304_v17 = vpop.eup %3303  ;;  %3313 = vrcp.f32 %v549_v14  ;;  %v550_v18 = vadd.f32 1.0, %v3302_v15  ;;  %v164_v14 = vsel %vm148_vm9, 1.0, %v4807_v1  ;;  %v167_v15 = vsel %vm151_vm10, 1.0, %v4807_v1 }
 0x1e3   :  { %3315 = vrcp.f32 %v547_v16  ;;  %v548_v19 = vadd.f32 1.0, %v3304_v17  ;;  %v4117_v17 = vpack.c.bf16 %v165_v11, %v164_v14  ;;  %vm153_vm12 = vcmp.eq.s32.totalorder %v3935_v39, %v129_v9 }
 0x1e4   :  { %3317 = vrcp.f32 %v550_v18 }
 0x1e5   :  { %3319 = vrcp.f32 %v548_v19  ;;  %v135_v19 = vpop.permute.xlu1 %134 }
 0x1e6   :  { %vm155_vm15 = vcmp.eq.s32.totalorder %v3935_v39, %v135_v19 }
 0x1e7   :  { %v3306_v22 = vpop.eup %3305 }
 0x1e8   :  { %v3308_v23 = vpop.eup %3307  ;;  %v553_v24 = vadd.f32 1.0, %v3306_v22 }
 0x1e9   :  { %v3310_v25 = vpop.eup %3309  ;;  %v551_v26 = vadd.f32 1.0, %v3308_v23  ;;  %v169_v23 = vsel %vm153_vm12, 1.0, %v4807_v1 }
 0x1ea   :  { %v3312_v27 = vpop.eup %3311  ;;  %3321 = vrcp.f32 %v553_v24  ;;  %v554_v28 = vadd.f32 1.0, %v3310_v25  ;;  %v171_v25 = vsel %vm155_vm15, 1.0, %v4807_v1 }
 0x1eb   :  { %3323 = vrcp.f32 %v551_v26  ;;  %v552_v29 = vadd.f32 1.0, %v3312_v27  ;;  %v141_v27 = vpop.permute.xlu1 %140 }
 0x1ec   :  { %v3314_v30 = vpop.eup %3313  ;;  %3325 = vrcp.f32 %v554_v28  ;;  %vm157_vm5 = vcmp.eq.s32.totalorder %v3935_v39, %v141_v27 }
 0x1ed   :  { %v3316_v31 = vpop.eup %3315  ;;  %3327 = vrcp.f32 %v552_v29  ;;  %v4074_v41 = vmul.f32 %v3314_v30, %v4061_v48 }
 0x1ee   :  { %v3318_v34 = vpop.eup %3317  ;;  %v4067_v36 = vmul.f32 %v3316_v31, %v515_v50  ;;  %v173_v31 = vsel %vm157_vm5, 1.0, %v4807_v1 }
 0x1ef   :  { %v3320_v35 = vpop.eup %3319  ;;  %v4069_v37 = vmul.f32 %v3318_v34, %v518_v53  ;;  %v2977_v34 = vpop.f32.mrb[8].mxu0 }
 0x1f0   :  { %v4071_v40 = vmul.f32 %v3320_v35, %v516_v56  ;;  %v688_v35 = vpop.f32.mrb[9].mxu0 }
 0x1f1   :  { %v848_v52 = vpack.c.bf16 %v4069_v37, %v4074_v41 }
 0x1f2   :  { %v847_v46 = vpack.c.bf16 %v4071_v40, %v4067_v36 }
 0x1f4   :  { %v3322_v51 = vpop.eup %3321  ;;  %2987 = vmatprep.subr.bf16.mxu1 %v847_v46 }
 0x1f5   :  { %v3324_v54 = vpop.eup %3323  ;;  %2988 = vmatpush3.bf16.msra.mxu1 %v847_v46  ;;  %v4087_v59 = vmul.f32 %v3322_v51, %v4064_v60  ;;  %v161_v60 = vsel %vm145_vm4, 1.0, %v4807_v1  ;;  %v2978_v46 = vpop.f32.mrb[10].mxu0 }
 0x1f6   :  { %v3326_v50 = vpop.eup %3325  ;;  %2989 = vmatprep.subr.bf16.mxu1 %v848_v52  ;;  %v4080_v55 = vmul.f32 %v3324_v54, %v519_v62  ;;  %v691_v47 = vpop.f32.mrb[11].mxu0 }
 0x1f7   :  { %v3328_v53 = vpop.eup %3327  ;;  %v4082_v56 = vmul.f32 %v3326_v50, %v522_v2  ;;  %v120_v2 = vpop.permute.xlu0 %119 }
 0x1f8   :  { %v4084_v48 = vmul.f32 %v3328_v53, %v520_v7  ;;  %v4101_v7 = vpack.c.bf16 %v161_v60, %v160_v63  ;;  %vm150_vm11 = vcmp.eq.s32.totalorder %v3935_v39, %v120_v2  ;;  %v4809_v63 = vmov 1.0|1.0   ;;  %v4185_v2 = vld [vmem:[%s4790_s11] ss:$0 sm:$0xff] }
 0x1f9   :  { %2990 = vmatpush3.bf16.msra.mxu1 %v848_v52  ;;  %v850_v62 = vpack.c.bf16 %v4082_v56, %v4087_v59  ;;  %v166_v16 = vsel %vm150_vm11, 1.0, %v4807_v1  ;;  %v4192_v4 = vadd.f32 %v4050_v42, %v4185_v2  ;;  %v4196_v9 = vadd.f32 %v4185_v2, %v4052_v43  ;;  %v3260_v42 = vld [vmem:[%s4791_s12 + $0x20] sm:$0xff]  }
 0x1fa   :  { %v849_v61 = vpack.c.bf16 %v4084_v48, %v4080_v55  ;;  %v4119_v18 = vpack.c.bf16 %v167_v15, %v166_v16  ;;  %v4208_v15 = vadd.f32 %v4054_v44, %v4185_v2  ;;  %v4212_v43 = vadd.f32 %v4185_v2, %v4056_v45 }
 0x1fb   :  { %v126_v10 = vpop.permute.xlu0 %125  ;;  %v2625_v11 = vmul.f32 -1.442695, %v4192_v4  ;;  %v2623_v14 = vmul.f32 -1.442695, %v4196_v9  ;;  %v4215_v16 = vadd.f32 %v2977_v34, %v4185_v2  ;;  %v4218_v19 = vadd.f32 %v4185_v2, %v688_v35 }
 0x1fc   :  { %2991 = vmatprep.subr.bf16.mxu1 %v849_v61  ;;  %vm152_vm14 = vcmp.eq.s32.totalorder %v3935_v39, %v126_v10  ;;  %v3259_v10 = vld [vmem:[%s4791_s12 + $0x18] sm:$0xff]   ;;  %v2626_v44 = vmul.f32 -1.442695, %v4208_v15 }
 0x1fd   :  { %2992 = vmatpush3.bf16.msra.mxu1 %v849_v61  ;;  %v168_v24 = vsel %vm152_vm14, 1.0, %v4807_v1  ;;  %v185_v61 = vadd.s32 8, %v4158_v58  ;;  %3329 = vpow2.f32 %v2625_v11  ;;  %v2629_v45 = vmul.f32 -1.442695, %v4215_v16 }
 0x1fe   :  { %2993 = vmatprep.subr.bf16.mxu1 %v850_v62  ;;  %v4133_v29 = vpack.c.bf16 %v169_v23, %v168_v24  ;;  %3331 = vpow2.f32 %v2623_v14  ;;  %v2624_v23 = vmul.f32 -1.442695, %v4212_v43  ;;  %v2627_v24 = vmul.f32 -1.442695, %v4218_v19 }
 0x1ff   :  { %v132_v22 = vpop.permute.xlu0 %131  ;;  %3333 = vpow2.f32 %v2626_v44 }
 0x200   :  { %vm154_vm4 = vcmp.eq.s32.totalorder %v3935_v39, %v132_v22  ;;  %v3261_v22 = vld [vmem:[%s4791_s12 + $0x28] sm:$0xff]   ;;  %3335 = vpow2.f32 %v2624_v23 }
 0x201   :  { %2994 = vmatpush3.bf16.msra.mxu1 %v850_v62  ;;  %v170_v26 = vsel %vm154_vm4, 1.0, %v4807_v1  ;;  %v4164_v62 = vld [vmem:[%s4842_s30] ss:$0 sm:$0xff]  ;;  %3337 = vpow2.f32 %v2629_v45 }
 0x202   :  { %v4135_v30 = vpack.c.bf16 %v171_v25, %v170_v26  ;;  %vm196_vm7 = vcmp.eq.s32.totalorder %v4158_v58, %v4164_v62  ;;  %vm197_vm8 = vcmp.eq.s32.totalorder %v185_v61, %v4164_v62  ;;  %3035 = vmatprep.subr.bf16.mxu1 %v3256_v38  ;;  %v4228_v25 = vadd.f32 %v2978_v46, %v4185_v2 }
 0x203   :  { %v138_v28 = vpop.permute.xlu0 %137  ;;  %vm4169_vm9 = vmpackc.low %vm197_vm8, %vm196_vm7  ;;  %v4231_v26 = vadd.f32 %v4185_v2, %v691_v47  ;;  %3339 = vpow2.f32 %v2627_v24 }
 0x204   :  { %2996 = vmatmul.mubr.msk.bf16.vlgmr.msra.gmra.mrb[8].mxu1 %vm851_vm3, %v4101_v7  ;;  %vm156_vm6 = vcmp.eq.s32.totalorder %v3935_v39, %v138_v28  ;;  %v2981_v39 = vpop.f32.mrb[12].mxu0  ;;  %3027 = vmatprep.mubr.msk.bf16.mxu0 %vm4169_vm9, %v4809_v63  ;;  %v2630_v28 = vmul.f32 -1.442695, %v4228_v25 }
 0x205   :  { %2999 = vmatprep.mubr.msk.bf16.mxu1 %vm851_vm3, %v4103_v8  ;;  %v172_v32 = vsel %vm156_vm6, 1.0, %v4807_v1  ;;  %v704_v49 = vpop.f32.mrb[13].mxu0  ;;  %3036 = vmatpush3.bf16.msra.mxu1 %v3256_v38  ;;  %v4236_v34 = vadd.f32 %v2981_v39, %v4185_v2 }
 0x206   :  { %v4145_v33 = vpack.c.bf16 %v173_v31, %v172_v32  ;;  %v2982_v51 = vpop.f32.mrb[14].mxu0  ;;  %3037 = vmatprep.subr.bf16.mxu1 %v3257_v0  ;;  %v2628_v32 = vmul.f32 -1.442695, %v4231_v26  ;;  %v4239_v35 = vadd.f32 %v4185_v2, %v704_v49  ;;  %3341 = vpow2.f32 %v2630_v28 }
 0x207   :  { %v707_v52 = vpop.f32.mrb[15].mxu0  ;;  %v3330_v27 = vpop.eup %3329  ;;  %v4242_v61 = vadd.f32 %v2982_v51, %v4185_v2 }
 0x208   :  { %v4149_v54 = vpop.f32.mrb[16].mxu0  ;;  %v3332_v31 = vpop.eup %3331  ;;  %v785_v46 = vadd.f32 1.0, %v3330_v27  ;;  %v4245_v38 = vadd.f32 %v4185_v2, %v707_v52  ;;  %3343 = vpow2.f32 %v2628_v32 }
 0x209   :  { %v4151_v50 = vpop.f32.mrb[17].mxu0  ;;  %3038 = vmatpush3.bf16.msra.mxu1 %v3257_v0  ;;  %v783_v47 = vadd.f32 1.0, %v3332_v31  ;;  %v2633_v0 = vmul.f32 -1.442695, %v4236_v34  ;;  %v2634_v49 = vmul.f32 -1.442695, %v4242_v61  ;;  %v4253_v52 = vadd.f32 %v4149_v54, %v4185_v2 }
 0x20a   :  { %v4153_v53 = vpop.f32.mrb[18].mxu0  ;;  %3039 = vmatprep.subr.bf16.mxu1 %v3258_v3  ;;  %3345 = vrcp.f32 %v785_v46  ;;  %v2632_v51 = vmul.f32 -1.442695, %v4245_v38  ;;  %v4257_v44 = vadd.f32 %v4185_v2, %v4151_v50 }
 0x20b   :  { %v4155_v57 = vpop.f32.mrb[19].mxu0  ;;  %3347 = vrcp.f32 %v783_v47  ;;  %v4261_v45 = vadd.f32 %v4153_v53, %v4185_v2  ;;  %v2637_v54 = vmul.f32 -1.442695, %v4253_v52 }
 0x20c   :  { %3000 = vmatmul.mubr.msk.bf16.gmra.mrb[12].mxu1 %vm851_vm3, %v4117_v17  ;;  %3349 = vpow2.f32 %v2633_v0  ;;  %v4265_v27 = vadd.f32 %v4185_v2, %v4155_v57  ;;  %v2635_v50 = vmul.f32 -1.442695, %v4257_v44 }
 0x20d   :  { %3003 = vmatprep.mubr.msk.bf16.mxu1 %vm851_vm3, %v4119_v18  ;;  %3040 = vmatpush3.bf16.msra.mxu1 %v3258_v3  ;;  %v3334_v3 = vpop.eup %3333  ;;  %v2638_v32 = vmul.f32 -1.442695, %v4261_v45 }
 0x20e   :  { %3041 = vmatprep.subr.bf16.mxu1 %v3259_v10  ;;  %v3336_v39 = vpop.eup %3335  ;;  %v2636_v53 = vmul.f32 -1.442695, %v4265_v27 }
 0x20f   :  { %v3338_v11 = vpop.eup %3337 }
 0x210   :  { %v3340_v14 = vpop.eup %3339  ;;  %v789_v23 = vadd.f32 1.0, %v3338_v11 }
 0x211   :  { %3042 = vmatpush3.bf16.msra.mxu1 %v3259_v10  ;;  %v2631_v10 = vmul.f32 -1.442695, %v4239_v35  ;;  %v787_v24 = vadd.f32 1.0, %v3340_v14  ;;  %v3342_v28 = vpop.eup %3341 }
 0x212   :  { %3043 = vmatprep.subr.bf16.mxu1 %v3260_v42  ;;  %v3344_v31 = vpop.eup %3343  ;;  %v790_v47 = vadd.f32 1.0, %v3342_v28 }
 0x213   :  { %3351 = vpow2.f32 %v2631_v10  ;;  %v788_v57 = vadd.f32 1.0, %v3344_v31 }
 0x214   :  { %3004 = vmatmul.mubr.msk.bf16.gmra.mrb[16].mxu1 %vm851_vm3, %v4133_v29  ;;  %3353 = vpow2.f32 %v2634_v49  ;;  %v3346_v46 = vpop.eup %3345 }
 0x215   :  { %3007 = vmatprep.mubr.msk.bf16.mxu1 %vm851_vm3, %v4135_v30  ;;  %3044 = vmatpush3.bf16.msra.mxu1 %v3260_v42  ;;  %v786_v42 = vadd.f32 1.0, %v3334_v3  ;;  %3355 = vpow2.f32 %v2632_v51  ;;  %v3348_v0 = vpop.eup %3347 }
 0x216   :  { %3045 = vmatprep.subr.bf16.mxu1 %v3261_v22  ;;  %v3350_v2 = vpop.eup %3349  ;;  %v4275_v28 = vmul.f32 %v3348_v0, %v4196_v9 }
 0x217   :  { %3357 = vrcp.f32 %v786_v42  ;;  %v793_v49 = vadd.f32 1.0, %v3350_v2 }
 0x219   :  { %3046 = vmatpush3.bf16.msra.mxu1 %v3261_v22  ;;  %v784_v22 = vadd.f32 1.0, %v3336_v39 }
 0x21b   :  { %3359 = vrcp.f32 %v784_v22  ;;  %v4272_v22 = vmul.f32 %v3346_v46, %v4192_v4 }
 0x21c   :  { %3008 = vmatmul.mubr.msk.bf16.gmra.mrb[20].mxu1 %vm851_vm3, %v4145_v33  ;;  %3361 = vrcp.f32 %v789_v23 }
 0x21d   :  { %3363 = vrcp.f32 %v787_v24  ;;  %v3352_v3 = vpop.eup %3351 }
 0x21e   :  { %3365 = vpow2.f32 %v2637_v54  ;;  %v3354_v10 = vpop.eup %3353  ;;  %v791_v51 = vadd.f32 1.0, %v3352_v3 }
 0x21f   :  { %3367 = vpow2.f32 %v2635_v50  ;;  %v3356_v39 = vpop.eup %3355  ;;  %v794_v42 = vadd.f32 1.0, %v3354_v10 }
 0x220   :  { %3369 = vpow2.f32 %v2638_v32  ;;  %v792_v24 = vadd.f32 1.0, %v3356_v39 }
 0x221   :  { %3371 = vpow2.f32 %v2636_v53  ;;  %v3358_v11 = vpop.eup %3357 }
 0x222   :  { %3373 = vrcp.f32 %v790_v47  ;;  %v4281_v53 = vmul.f32 %v3358_v11, %v4208_v15 }
 0x223   :  { %3375 = vrcp.f32 %v788_v57 }
 0x224   :  { %3377 = vrcp.f32 %v793_v49 }
 0x225   :  { %v3360_v14 = vpop.eup %3359  ;;  %3379 = vrcp.f32 %v791_v51 }
 0x226   :  { %v3362_v23 = vpop.eup %3361  ;;  %v4287_v57 = vmul.f32 %v3360_v14, %v4212_v43  ;;  %3381 = vrcp.f32 %v794_v42 }
 0x227   :  { %v3364_v50 = vpop.eup %3363  ;;  %3383 = vrcp.f32 %v792_v24  ;;  %v4300_v24 = vmul.f32 %v3362_v23, %v4215_v16 }
 0x228   :  { %v3366_v47 = vpop.eup %3365  ;;  %v4303_v1 = vmul.f32 %v3364_v50, %v4218_v19 }
 0x229   :  { %v3368_v9 = vpop.eup %3367  ;;  %v797_v11 = vadd.f32 1.0, %v3366_v47 }
 0x22a   :  { %v3370_v10 = vpop.eup %3369  ;;  %v795_v14 = vadd.f32 1.0, %v3368_v9 }
 0x22b   :  { %v3372_v49 = vpop.eup %3371 }
 0x22c   :  { %v3374_v51 = vpop.eup %3373 }
 0x2d7   :  { %v2997_v54 = vpop.f32.mrb[8].mxu1 }
 0x2d8   :  { %v4278_v31 = vadd.f32 %v2997_v54, %v4272_v22  ;;  %v910_v32 = vpop.f32.mrb[9].mxu1  ;;  %v3376_v54 = vpop.eup %3375 }
 0x2d9   :  { %v4284_v4 = vadd.f32 %v910_v32, %v4275_v28  ;;  %v2998_v46 = vpop.f32.mrb[10].mxu1  ;;  %v798_v32 = vadd.f32 1.0, %v3370_v10  ;;  %v4315_v23 = vmul.f32 %v3376_v54, %v4231_v26 }
 0x2da   :  { %v2649_v0 = vmul.f32 -1.442695, %v4278_v31  ;;  %v4291_v2 = vadd.f32 %v2998_v46, %v4281_v53  ;;  %v913_v3 = vpop.f32.mrb[11].mxu1  ;;  %v796_v46 = vadd.f32 1.0, %v3372_v49 }
 0x2db   :  { %v2647_v15 = vmul.f32 -1.442695, %v4284_v4  ;;  %v4295_v39 = vadd.f32 %v913_v3, %v4287_v57 }
 0x2dc   :  { %3385 = vpow2.f32 %v2649_v0  ;;  %v2650_v43 = vmul.f32 -1.442695, %v4291_v2  ;;  %v4309_v0 = vmul.f32 %v3374_v51, %v4228_v25 }
 0x2dd   :  { %3387 = vpow2.f32 %v2647_v15  ;;  %v2648_v42 = vmul.f32 -1.442695, %v4295_v39  ;;  %v3378_v15 = vpop.eup %3377 }
 0x2de   :  { %3389 = vpow2.f32 %v2650_v43 }
 0x2df   :  { %3391 = vpow2.f32 %v2648_v42  ;;  %v3001_v3 = vpop.f32.mrb[12].mxu1 }
 0x2e0   :  { %3393 = vrcp.f32 %v797_v11  ;;  %v4306_v47 = vadd.f32 %v3001_v3, %v4300_v24  ;;  %v926_v9 = vpop.f32.mrb[13].mxu1  ;;  %v3380_v11 = vpop.eup %3379 }
 0x2e1   :  { %3395 = vrcp.f32 %v795_v14  ;;  %v4312_v10 = vadd.f32 %v926_v9, %v4303_v1  ;;  %v3002_v16 = vpop.f32.mrb[14].mxu1  ;;  %v3382_v51 = vpop.eup %3381 }
 0x2e2   :  { %3397 = vrcp.f32 %v798_v32  ;;  %v2653_v19 = vmul.f32 -1.442695, %v4306_v47  ;;  %v4319_v50 = vadd.f32 %v3002_v16, %v4309_v0  ;;  %v929_v49 = vpop.f32.mrb[15].mxu1  ;;  %v3384_v14 = vpop.eup %3383  ;;  %v4328_v32 = vmul.f32 %v3378_v15, %v4236_v34 }
 0x2e3   :  { %3399 = vrcp.f32 %v796_v46  ;;  %v2651_v25 = vmul.f32 -1.442695, %v4312_v10  ;;  %v4323_v43 = vadd.f32 %v929_v49, %v4315_v23  ;;  %v4331_v16 = vmul.f32 %v3380_v11, %v4239_v35 }
 0x2e4   :  { %3401 = vpow2.f32 %v2653_v19  ;;  %v2654_v26 = vmul.f32 -1.442695, %v4319_v50  ;;  %v4337_v6 = vmul.f32 %v3382_v51, %v4242_v61 }
 0x2e5   :  { %3403 = vpow2.f32 %v2651_v25  ;;  %v2652_v42 = vmul.f32 -1.442695, %v4323_v43  ;;  %4845 = vst [vmem:[#allocation13_spill] sm:$0xff] %v4331_v16 }
 0x2e6   :  { %v3386_v54 = vpop.eup %3385  ;;  %3405 = vpow2.f32 %v2654_v26  ;;  %4846 = vst [vmem:[#allocation14_spill] sm:$0xff] %v4337_v6 }
 0x2e7   :  { %v3388_v3 = vpop.eup %3387  ;;  %v1023_v46 = vadd.f32 1.0, %v3386_v54  ;;  %3407 = vpow2.f32 %v2652_v42  ;;  %v3005_v9 = vpop.f32.mrb[16].mxu1  ;;  %v4343_v54 = vmul.f32 %v3384_v14, %v4245_v38 }
 0x2e8   :  { %v3390_v49 = vpop.eup %3389  ;;  %v1021_v19 = vadd.f32 1.0, %v3388_v3  ;;  %v4334_v63 = vadd.f32 %v3005_v9, %v4328_v32  ;;  %v942_v25 = vpop.f32.mrb[17].mxu1 }
 0x2e9   :  { %v3392_v26 = vpop.eup %3391  ;;  %3409 = vrcp.f32 %v1023_v46  ;;  %v1024_v34 = vadd.f32 1.0, %v3390_v49  ;;  %v4340_v15 = vadd.f32 %v942_v25, %v4331_v16  ;;  %v3006_v42 = vpop.f32.mrb[18].mxu1  ;;  %4847 = vst [vmem:[#allocation15_spill] sm:$0xff] %v4343_v54 }
 0x2ea   :  { %v3394_v35 = vpop.eup %3393  ;;  %3411 = vrcp.f32 %v1021_v19  ;;  %v1022_v11 = vadd.f32 1.0, %v3392_v26  ;;  %v2657_v3 = vmul.f32 -1.442695, %v4334_v63  ;;  %v4347_v9 = vadd.f32 %v3006_v42, %v4337_v6  ;;  %v945_v61 = vpop.f32.mrb[19].mxu1 }
 0x2eb   :  { %v3396_v51 = vpop.eup %3395  ;;  %3413 = vrcp.f32 %v1024_v34  ;;  %v2655_v46 = vmul.f32 -1.442695, %v4340_v15  ;;  %v4351_v49 = vadd.f32 %v945_v61, %v4343_v54  ;;  %v4356_v42 = vmul.f32 %v3394_v35, %v4253_v52 }
 0x2ec   :  { %v3398_v25 = vpop.eup %3397  ;;  %3415 = vrcp.f32 %v1022_v11  ;;  %v2658_v38 = vmul.f32 -1.442695, %v4347_v9  ;;  %v4359_v61 = vmul.f32 %v3396_v51, %v4257_v44 }
 0x2ed   :  { %v3400_v14 = vpop.eup %3399  ;;  %3417 = vpow2.f32 %v2657_v3  ;;  %v2656_v19 = vmul.f32 -1.442695, %v4351_v49  ;;  %4848 = vst [vmem:[#allocation16_spill] sm:$0xff] %v4356_v42  ;;  %v4365_v54 = vmul.f32 %v3398_v25, %v4261_v45 }
 0x2ee   :  { %v3402_v26 = vpop.eup %3401  ;;  %3419 = vpow2.f32 %v2655_v46  ;;  %4849 = vst [vmem:[#allocation17_spill] sm:$0xff] %v4359_v61  ;;  %v4371_v44 = vmul.f32 %v3400_v14, %v4265_v27 }
 0x2ef   :  { %v3404_v20 = vpop.eup %3403  ;;  %v1027_v34 = vadd.f32 1.0, %v3402_v26  ;;  %3421 = vpow2.f32 %v2658_v38  ;;  %v3009_v13 = vpop.f32.mrb[20].mxu1  ;;  %4850 = vst [vmem:[#allocation18_spill] sm:$0xff] %v4365_v54 }
 0x2f0   :  { %v3406_v12 = vpop.eup %3405  ;;  %v1025_v11 = vadd.f32 1.0, %v3404_v20  ;;  %3423 = vpow2.f32 %v2656_v19  ;;  %v4362_v5 = vadd.f32 %v3009_v13, %v4356_v42  ;;  %v958_v3 = vpop.f32.mrb[21].mxu1  ;;  %4851 = vst [vmem:[#allocation19_spill] sm:$0xff] %v4371_v44 }
 0x2f1   :  { %v3408_v46 = vpop.eup %3407  ;;  %3425 = vrcp.f32 %v1027_v34  ;;  %v1028_v52 = vadd.f32 1.0, %v3406_v12  ;;  %v4368_v35 = vadd.f32 %v958_v3, %v4359_v61  ;;  %v3010_v38 = vpop.f32.mrb[22].mxu1 }
 0x2f2   :  { %3427 = vrcp.f32 %v1025_v11  ;;  %v1026_v20 = vadd.f32 1.0, %v3408_v46  ;;  %v2661_v51 = vmul.f32 -1.442695, %v4362_v5  ;;  %v4375_v13 = vadd.f32 %v3010_v38, %v4365_v54  ;;  %v961_v19 = vpop.f32.mrb[23].mxu1 }
 0x2f3   :  { %v3410_v45 = vpop.eup %3409  ;;  %3429 = vrcp.f32 %v1028_v52  ;;  %v2659_v25 = vmul.f32 -1.442695, %v4368_v35  ;;  %v4379_v12 = vadd.f32 %v961_v19, %v4371_v44 }
 0x2f4   :  { %v3412_v26 = vpop.eup %3411  ;;  %3431 = vrcp.f32 %v1026_v20  ;;  %v2662_v27 = vmul.f32 -1.442695, %v4375_v13  ;;  %v1071_v3 = vmul.f32 %v3410_v45, %v4278_v31 }
 0x2f5   :  { %v3414_v14 = vpop.eup %3413  ;;  %3433 = vpow2.f32 %v2661_v51  ;;  %v2660_v34 = vmul.f32 -1.442695, %v4379_v12  ;;  %v1069_v38 = vmul.f32 %v3412_v26, %v4284_v4 }
 0x2f6   :  { %v3416_v11 = vpop.eup %3415  ;;  %v1072_v46 = vmul.f32 %v3414_v14, %v4291_v2  ;;  %3435 = vpow2.f32 %v2659_v25 }
 0x2f7   :  { %v3418_v52 = vpop.eup %3417  ;;  %v1070_v19 = vmul.f32 %v3416_v11, %v4295_v39  ;;  %3437 = vpow2.f32 %v2662_v27 }
 0x2f8   :  { %v3420_v44 = vpop.eup %3419  ;;  %v1031_v20 = vadd.f32 1.0, %v3418_v52  ;;  %3439 = vpow2.f32 %v2660_v34  ;;  %v1086_v54 = vpack.c.bf16 %v1072_v46, %v1071_v3 }
 0x2f9   :  { %v3422_v61 = vpop.eup %3421  ;;  %v1029_v51 = vadd.f32 1.0, %v3420_v44  ;;  %v1085_v42 = vpack.c.bf16 %v1070_v19, %v1069_v38 }
 0x2fa   :  { %v3424_v6 = vpop.eup %3423  ;;  %3441 = vrcp.f32 %v1031_v20  ;;  %v1032_v16 = vadd.f32 1.0, %v3422_v61 }
 0x2fb   :  { %v3426_v31 = vpop.eup %3425  ;;  %3443 = vrcp.f32 %v1029_v51  ;;  %v1030_v2 = vadd.f32 1.0, %v3424_v6  ;;  %3011 = vmatprep.subr.bf16.mxu0 %v1085_v42 }
 0x2fc   :  { %v3428_v45 = vpop.eup %3427  ;;  %3445 = vrcp.f32 %v1032_v16  ;;  %3012 = vmatpush3.bf16.msra.mxu0 %v1085_v42  ;;  %v1075_v25 = vmul.f32 %v3426_v31, %v4306_v47 }
 0x2fd   :  { %v3430_v4 = vpop.eup %3429  ;;  %3447 = vrcp.f32 %v1030_v2  ;;  %3013 = vmatprep.subr.bf16.mxu0 %v1086_v54  ;;  %v1073_v27 = vmul.f32 %v3428_v45, %v4312_v10 }
 0x2fe   :  { %v3432_v39 = vpop.eup %3431  ;;  %v1076_v26 = vmul.f32 %v3430_v4, %v4319_v50 }
 0x2ff   :  { %v3434_v44 = vpop.eup %3433  ;;  %v1074_v61 = vmul.f32 %v3432_v39, %v4323_v43 }
 0x300   :  { %v3436_v14 = vpop.eup %3435  ;;  %v1035_v34 = vadd.f32 1.0, %v3434_v44  ;;  %3014 = vmatpush3.bf16.msra.mxu0 %v1086_v54  ;;  %v1088_v6 = vpack.c.bf16 %v1076_v26, %v1075_v25  ;;  %v186_v44 = vadd.s32 16, %v4158_v58 }
 0x301   :  { %v3438_v11 = vpop.eup %3437  ;;  %v1033_v16 = vadd.f32 1.0, %v3436_v14  ;;  %v1087_v42 = vpack.c.bf16 %v1074_v61, %v1073_v27  ;;  %v187_v27 = vadd.s32 24, %v4158_v58  ;;  %v188_v61 = vadd.s32 32, %v4158_v58 }
 0x302   :  { %v3440_v3 = vpop.eup %3439  ;;  %3449 = vrcp.f32 %v1035_v34  ;;  %v1036_v46 = vadd.f32 1.0, %v3438_v11  ;;  %v189_v14 = vadd.s32 40, %v4158_v58  ;;  %vm198_vm10 = vcmp.eq.s32.totalorder %v186_v44, %v4164_v62  ;;  %v3262_v11 = vld [vmem:[%s4791_s12 + $0x30] sm:$0xff]  }
 0x303   :  { %3451 = vrcp.f32 %v1033_v16  ;;  %v1034_v52 = vadd.f32 1.0, %v3440_v3  ;;  %3015 = vmatprep.subr.bf16.mxu0 %v1087_v42  ;;  %vm199_vm11 = vcmp.eq.s32.totalorder %v187_v27, %v4164_v62  ;;  %vm200_vm12 = vcmp.eq.s32.totalorder %v188_v61, %v4164_v62  ;;  %3047 = vmatprep.subr.bf16.mxu1 %v3262_v11 }
 0x304   :  { %v3442_v47 = vpop.eup %3441  ;;  %3453 = vrcp.f32 %v1036_v46  ;;  %3016 = vmatpush3.bf16.msra.mxu0 %v1087_v42  ;;  %vm201_vm14 = vcmp.eq.s32.totalorder %v189_v14, %v4164_v62  ;;  %vm4407_vm15 = vmpackc.low %vm199_vm11, %vm198_vm10  ;;  %v4856_v34 = vmov 1.0|1.0   ;;  %3048 = vmatpush3.bf16.msra.mxu1 %v3262_v11 }
 0x305   :  { %v3444_v50 = vpop.eup %3443  ;;  %3455 = vrcp.f32 %v1034_v52  ;;  %3017 = vmatprep.subr.bf16.mxu0 %v1088_v6  ;;  %v1079_v54 = vmul.f32 %v3442_v47, %v4334_v63  ;;  %vm4411_vm4 = vmpackc.low %vm201_vm14, %vm200_vm12 }
 0x306   :  { %v3446_v10 = vpop.eup %3445  ;;  %v1077_v19 = vmul.f32 %v3444_v50, %v4340_v15 }
 0x307   :  { %v3448_v43 = vpop.eup %3447  ;;  %v1080_v38 = vmul.f32 %v3446_v10, %v4347_v9 }
 0x308   :  { %v1078_v20 = vmul.f32 %v3448_v43, %v4351_v49  ;;  %3018 = vmatpush3.bf16.msra.mxu0 %v1088_v6  ;;  %v4868_v6 = vld [vmem:[#allocation11_spill] sm:$0xff] }
 0x309   :  { %v1090_v51 = vpack.c.bf16 %v1080_v38, %v1079_v54 }
 0x30a   :  { %v1089_v31 = vpack.c.bf16 %v1078_v20, %v1077_v19 }
 0x30c   :  { %v3450_v2 = vpop.eup %3449  ;;  %3019 = vmatprep.subr.bf16.mxu0 %v1089_v31 }
 0x30d   :  { %v3452_v45 = vpop.eup %3451  ;;  %3020 = vmatpush3.bf16.msra.mxu0 %v1089_v31  ;;  %v1083_v25 = vmul.f32 %v3450_v2, %v4362_v5  ;;  %v3271_v5 = vld [vmem:[%s4791_s12 + $0x78] sm:$0xff]  }
 0x30e   :  { %v3454_v4 = vpop.eup %3453  ;;  %3021 = vmatprep.subr.bf16.mxu0 %v1090_v51  ;;  %v1081_v9 = vmul.f32 %v3452_v45, %v4368_v35  ;;  %v3272_v35 = vld [vmem:[%s4794_s15] sm:$0xff]  }
 0x30f   :  { %v3456_v39 = vpop.eup %3455  ;;  %v1084_v63 = vmul.f32 %v3454_v4, %v4375_v13  ;;  %v190_v13 = vadd.s32 48, %v4158_v58 }
 0x310   :  { %v1082_v15 = vmul.f32 %v3456_v39, %v4379_v12  ;;  %v191_v12 = vadd.s32 56, %v4158_v58 }
 0x311   :  { %3022 = vmatpush3.bf16.msra.mxu0 %v1090_v51  ;;  %v1092_v49 = vpack.c.bf16 %v1084_v63, %v1083_v25  ;;  %vm202_vm5 = vcmp.eq.s32.totalorder %v190_v13, %v4164_v62  ;;  %v2671_v25 = vld [vmem:[%s4792_s13] ss:$0 sm:$0xff] }
 0x312   :  { %v1091_v26 = vpack.c.bf16 %v1082_v15, %v1081_v9  ;;  %vm203_vm6 = vcmp.eq.s32.totalorder %v191_v12, %v4164_v62  ;;  %v3263_v62 = vld [vmem:[%s4791_s12 + $0x38] sm:$0xff]  }
 0x313   :  { %vm4425_vm7 = vmpackc.low %vm203_vm6, %vm202_vm5  ;;  %3049 = vmatprep.subr.bf16.mxu1 %v3263_v62 }
 0x314   :  { %3023 = vmatprep.subr.bf16.mxu0 %v1091_v26  ;;  %3050 = vmatpush3.bf16.msra.mxu1 %v3263_v62 }
 0x315   :  { %3024 = vmatpush3.bf16.msra.mxu0 %v1091_v26 }
 0x316   :  { %3025 = vmatprep.subr.bf16.mxu0 %v1092_v49 }
 0x319   :  { %3026 = vmatpush3.bf16.msra.mxu0 %v1092_v49 }
 0x31c   :  { %3028 = vmatmul.mubr.msk.bf16.vlgmr.msra.gmra.mrb[20].mxu0 %vm4407_vm15, %v4856_v34 }
 0x31d   :  { %3031 = vmatprep.mubr.msk.bf16.mxu0 %vm4411_vm4, %v4856_v34 }
 0x324   :  { %3032 = vmatmul.mubr.msk.bf16.gmra.mrb[24].mxu0 %vm4425_vm7, %v4856_v34 }
 0x325   :  { %3067 = vmatprep.mubr.msk.bf16.mxu0 %vm851_vm3, %v4002_v21 }
 0x3ef   :  { %v3029_v16 = vpop.f32.mrb[20].mxu0 }
 0x3f0   :  { %v1127_v42 = vpop.f32.mrb[21].mxu0  ;;  %v1160_v46 = vadd.f32 %v3029_v16, %v4074_v41 }
 0x3f1   :  { %v3030_v3 = vpop.f32.mrb[22].mxu0  ;;  %v1158_v47 = vadd.f32 %v1127_v42, %v4067_v36 }
 0x3f2   :  { %v1161_v52 = vadd.f32 %v3030_v3, %v4069_v37  ;;  %v1130_v21 = vpop.f32.mrb[23].mxu0 }
 0x3f3   :  { %v1159_v50 = vadd.f32 %v1130_v21, %v4071_v40 }
 0x3f4   :  { %v1183_v10 = vpack.c.bf16 %v1161_v52, %v1160_v46 }
 0x3f5   :  { %v1182_v43 = vpack.c.bf16 %v1159_v50, %v1158_v47 }
 0x3f7   :  { %v3033_v54 = vpop.f32.mrb[24].mxu0  ;;  %3051 = vmatprep.mubr.bf16.mxu1 %v1182_v43 }
 0x3f8   :  { %v1143_v38 = vpop.f32.mrb[25].mxu0  ;;  %3052 = vmatmul.mubr.bf16.vlgmr.msra.gmra.mrb[24].mxu1 %v1183_v10  ;;  %v1164_v20 = vadd.f32 %v3033_v54, %v4087_v59 }
 0x3f9   :  { %v3034_v19 = vpop.f32.mrb[26].mxu0  ;;  %v1162_v2 = vadd.f32 %v1143_v38, %v4080_v55 }
 0x3fa   :  { %v1165_v51 = vadd.f32 %v3034_v19, %v4082_v56  ;;  %v1146_v31 = vpop.f32.mrb[27].mxu0 }
 0x3fb   :  { %v1163_v45 = vadd.f32 %v1146_v31, %v4084_v48 }
 0x3fc   :  { %v1185_v4 = vpack.c.bf16 %v1165_v51, %v1164_v20 }
 0x3fd   :  { %v1184_v39 = vpack.c.bf16 %v1163_v45, %v1162_v2 }
 0x3ff   :  { %3055 = vmatprep.mubr.bf16.mxu1 %v1184_v39 }
 0x400   :  { %3056 = vmatmul.mubr.bf16.gmra.mrb[28].mxu1 %v1185_v4 }
 0x4cb   :  { %v3053_v63 = vpop.f32.mrb[24].mxu1 }
 0x4cc   :  { %v1284_v9 = vadd.f32 %v3053_v63, %v2671_v25  ;;  %v1275_v15 = vpop.f32.mrb[25].mxu1 }
 0x4cd   :  { %v1276_v49 = vadd.f32 %v2671_v25, %v1275_v15  ;;  %v3054_v26 = vpop.f32.mrb[26].mxu1 }
 0x4ce   :  { %v2682_v44 = vmul.f32 -1.442695, %v1284_v9  ;;  %v1287_v27 = vadd.f32 %v3054_v26, %v2671_v25  ;;  %v1278_v61 = vpop.f32.mrb[27].mxu1 }
 0x4cf   :  { %v2680_v14 = vmul.f32 -1.442695, %v1276_v49  ;;  %v1279_v13 = vadd.f32 %v2671_v25, %v1278_v61 }
 0x4d0   :  { %3457 = vpow2.f32 %v2682_v44  ;;  %v2683_v12 = vmul.f32 -1.442695, %v1287_v27 }
 0x4d1   :  { %3459 = vpow2.f32 %v2680_v14  ;;  %v2681_v11 = vmul.f32 -1.442695, %v1279_v13 }
 0x4d2   :  { %3461 = vpow2.f32 %v2683_v12 }
 0x4d3   :  { %3463 = vpow2.f32 %v2681_v11  ;;  %v3057_v62 = vpop.f32.mrb[28].mxu1 }
 0x4d4   :  { %v1300_v16 = vadd.f32 %v3057_v62, %v2671_v25  ;;  %v1291_v42 = vpop.f32.mrb[29].mxu1 }
 0x4d5   :  { %v1292_v3 = vadd.f32 %v2671_v25, %v1291_v42  ;;  %v3058_v46 = vpop.f32.mrb[30].mxu1 }
 0x4d6   :  { %v2686_v52 = vmul.f32 -1.442695, %v1300_v16  ;;  %v1303_v21 = vadd.f32 %v3058_v46, %v2671_v25  ;;  %v1294_v47 = vpop.f32.mrb[31].mxu1 }
 0x4d7   :  { %v2684_v50 = vmul.f32 -1.442695, %v1292_v3  ;;  %v1295_v10 = vadd.f32 %v2671_v25, %v1294_v47 }
 0x4d8   :  { %3465 = vpow2.f32 %v2686_v52  ;;  %v2687_v43 = vmul.f32 -1.442695, %v1303_v21 }
 0x4d9   :  { %3467 = vpow2.f32 %v2684_v50  ;;  %v2685_v54 = vmul.f32 -1.442695, %v1295_v10 }
 0x4da   :  { %v3458_v38 = vpop.eup %3457  ;;  %3469 = vpow2.f32 %v2687_v43 }
 0x4db   :  { %v3460_v19 = vpop.eup %3459  ;;  %v1332_v20 = vadd.f32 1.0, %v3458_v38  ;;  %3471 = vpow2.f32 %v2685_v54 }
 0x4dc   :  { %v3462_v51 = vpop.eup %3461  ;;  %v1330_v31 = vadd.f32 1.0, %v3460_v19 }
 0x4dd   :  { %v3464_v2 = vpop.eup %3463  ;;  %3473 = vrcp.f32 %v1332_v20  ;;  %v1333_v45 = vadd.f32 1.0, %v3462_v51 }
 0x4de   :  { %3475 = vrcp.f32 %v1330_v31  ;;  %v1331_v4 = vadd.f32 1.0, %v3464_v2 }
 0x4df   :  { %3477 = vrcp.f32 %v1333_v45 }
 0x4e0   :  { %3479 = vrcp.f32 %v1331_v4 }
 0x4e2   :  { %v3466_v39 = vpop.eup %3465 }
 0x4e3   :  { %v3468_v25 = vpop.eup %3467  ;;  %v1336_v63 = vadd.f32 1.0, %v3466_v39 }
 0x4e4   :  { %v3470_v15 = vpop.eup %3469  ;;  %v1334_v26 = vadd.f32 1.0, %v3468_v25 }
 0x4e5   :  { %v3472_v44 = vpop.eup %3471  ;;  %3481 = vrcp.f32 %v1336_v63  ;;  %v1337_v61 = vadd.f32 1.0, %v3470_v15 }
 0x4e6   :  { %3483 = vrcp.f32 %v1334_v26  ;;  %v1335_v14 = vadd.f32 1.0, %v3472_v44 }
 0x4e7   :  { %v3474_v12 = vpop.eup %3473  ;;  %3485 = vrcp.f32 %v1337_v61 }
 0x4e8   :  { %v3476_v11 = vpop.eup %3475  ;;  %3487 = vrcp.f32 %v1335_v14  ;;  %v1356_v47 = vmul.f32 %v3474_v12, %v1284_v9 }
 0x4e9   :  { %v3478_v62 = vpop.eup %3477  ;;  %v1354_v42 = vmul.f32 %v3476_v11, %v1276_v49 }
 0x4ea   :  { %v3480_v46 = vpop.eup %3479  ;;  %v1357_v52 = vmul.f32 %v3478_v62, %v1287_v27  ;;  %v4461_v20 = vadd.f32 %v1356_v47, %v4074_v41 }
 0x4eb   :  { %v1355_v50 = vmul.f32 %v3480_v46, %v1279_v13  ;;  %v4452_v43 = vadd.f32 %v1354_v42, %v4067_v36 }
 0x4ec   :  { %v4455_v54 = vadd.f32 %v1357_v52, %v4069_v37 }
 0x4ed   :  { %v4458_v38 = vadd.f32 %v1355_v50, %v4071_v40 }
 0x4ee   :  { %v1371_v36 = vpack.c.bf16 %v4455_v54, %v4461_v20 }
 0x4ef   :  { %v3482_v19 = vpop.eup %3481  ;;  %v1370_v49 = vpack.c.bf16 %v4458_v38, %v4452_v43 }
 0x4f0   :  { %v3484_v51 = vpop.eup %3483  ;;  %v1360_v31 = vmul.f32 %v3482_v19, %v1300_v16 }
 0x4f1   :  { %v3486_v27 = vpop.eup %3485  ;;  %v1358_v9 = vmul.f32 %v3484_v51, %v1292_v3  ;;  %3059 = vmatprep.subr.bf16.mxu0 %v1370_v49  ;;  %v4859_v51 = vld [vmem:[#allocation13_spill] sm:$0xff] }
 0x4f2   :  { %v3488_v13 = vpop.eup %3487  ;;  %v1361_v37 = vmul.f32 %v3486_v27, %v1303_v21  ;;  %3060 = vmatpush3.bf16.msra.mxu0 %v1370_v49  ;;  %v4477_v3 = vadd.f32 %v1360_v31, %v4087_v59  ;;  %v3267_v59 = vld [vmem:[%s4791_s12 + $0x58] sm:$0xff]  }
 0x4f3   :  { %v1359_v40 = vmul.f32 %v3488_v13, %v1295_v10  ;;  %3061 = vmatprep.subr.bf16.mxu0 %v1371_v36  ;;  %v4468_v2 = vadd.f32 %v1358_v9, %v4080_v55  ;;  %v3264_v55 = vld [vmem:[%s4791_s12 + $0x40] sm:$0xff]  }
 0x4f4   :  { %v4471_v41 = vadd.f32 %v1361_v37, %v4082_v56  ;;  %v3265_v56 = vld [vmem:[%s4791_s12 + $0x48] sm:$0xff]   ;;  %3107 = vmatprep.subr.bf16.mxu1 %v3264_v55  ;;  %v4860_v37 = vld [vmem:[#allocation14_spill] sm:$0xff] }
 0x4f5   :  { %v4474_v45 = vadd.f32 %v1359_v40, %v4084_v48  ;;  %3108 = vmatpush3.bf16.msra.mxu1 %v3264_v55  ;;  %v3266_v48 = vld [vmem:[%s4791_s12 + $0x50] sm:$0xff]  }
 0x4f6   :  { %3062 = vmatpush3.bf16.msra.mxu0 %v1371_v36  ;;  %v1373_v16 = vpack.c.bf16 %v4471_v41, %v4477_v3  ;;  %3109 = vmatprep.subr.bf16.mxu1 %v3265_v56 }
 0x4f7   :  { %v1372_v21 = vpack.c.bf16 %v4474_v45, %v4468_v2 }
 0x4f9   :  { %3063 = vmatprep.subr.bf16.mxu0 %v1372_v21  ;;  %3110 = vmatpush3.bf16.msra.mxu1 %v3265_v56 }
 0x4fa   :  { %3064 = vmatpush3.bf16.msra.mxu0 %v1372_v21  ;;  %3111 = vmatprep.subr.bf16.mxu1 %v3266_v48  ;;  %v4861_v21 = vld [vmem:[#allocation15_spill] sm:$0xff] }
 0x4fb   :  { %3065 = vmatprep.subr.bf16.mxu0 %v1373_v16 }
 0x4fd   :  { %3112 = vmatpush3.bf16.msra.mxu1 %v3266_v48 }
 0x4fe   :  { %3066 = vmatpush3.bf16.msra.mxu0 %v1373_v16  ;;  %3113 = vmatprep.subr.bf16.mxu1 %v3267_v59 }
 0x501   :  { %3068 = vmatmul.mubr.msk.bf16.vlgmr.msra.gmra.mrb[28].mxu0 %vm851_vm3, %v4101_v7  ;;  %v3268_v7 = vld [vmem:[%s4791_s12 + $0x60] sm:$0xff]   ;;  %3114 = vmatpush3.bf16.msra.mxu1 %v3267_v59 }
 0x502   :  { %3071 = vmatprep.mubr.msk.bf16.mxu0 %vm851_vm3, %v4103_v8  ;;  %3115 = vmatprep.subr.bf16.mxu1 %v3268_v7  ;;  %v3269_v8 = vld [vmem:[%s4791_s12 + $0x68] sm:$0xff]  }
 0x505   :  { %3116 = vmatpush3.bf16.msra.mxu1 %v3268_v7 }
 0x506   :  { %3117 = vmatprep.subr.bf16.mxu1 %v3269_v8 }
 0x509   :  { %3072 = vmatmul.mubr.msk.bf16.gmra.mrb[32].mxu0 %vm851_vm3, %v4117_v17  ;;  %3118 = vmatpush3.bf16.msra.mxu1 %v3269_v8 }
 0x50a   :  { %3075 = vmatprep.mubr.msk.bf16.mxu0 %vm851_vm3, %v4119_v18 }
 0x511   :  { %3076 = vmatmul.mubr.msk.bf16.gmra.mrb[36].mxu0 %vm851_vm3, %v4133_v29 }
 0x512   :  { %3079 = vmatprep.mubr.msk.bf16.mxu0 %vm851_vm3, %v4135_v30 }
 0x519   :  { %3080 = vmatmul.mubr.msk.bf16.gmra.mrb[40].mxu0 %vm851_vm3, %v4145_v33 }
 0x51a   :  { %3099 = vmatprep.mubr.msk.bf16.mxu0 %vm4169_vm9, %v4856_v34 }
 0x5d4   :  { %v3069_v17 = vpop.f32.mrb[28].mxu0 }
 0x5d5   :  { %v4519_v18 = vadd.f32 %v3069_v17, %v4272_v22  ;;  %v1408_v29 = vpop.f32.mrb[29].mxu0 }
 0x5d6   :  { %v4522_v30 = vadd.f32 %v1408_v29, %v4275_v28  ;;  %v3070_v33 = vpop.f32.mrb[30].mxu0 }
 0x5d7   :  { %v2698_v60 = vmul.f32 -1.442695, %v4519_v18  ;;  %v4526_v10 = vadd.f32 %v3070_v33, %v4281_v53  ;;  %v1411_v4 = vpop.f32.mrb[31].mxu0  ;;  %v4862_v33 = vld [vmem:[#allocation16_spill] sm:$0xff] }
 0x5d8   :  { %v2696_v39 = vmul.f32 -1.442695, %v4522_v30  ;;  %v4530_v25 = vadd.f32 %v1411_v4, %v4287_v57 }
 0x5d9   :  { %3489 = vpow2.f32 %v2698_v60  ;;  %v2699_v22 = vmul.f32 -1.442695, %v4526_v10 }
 0x5da   :  { %3491 = vpow2.f32 %v2696_v39  ;;  %v2697_v63 = vmul.f32 -1.442695, %v4530_v25 }
 0x5db   :  { %3493 = vpow2.f32 %v2699_v22 }
 0x5dc   :  { %3495 = vpow2.f32 %v2697_v63  ;;  %v3073_v28 = vpop.f32.mrb[32].mxu0  ;;  %v4863_v63 = vld [vmem:[#allocation17_spill] sm:$0xff] }
 0x5dd   :  { %v4535_v15 = vadd.f32 %v3073_v28, %v4300_v24  ;;  %v1424_v53 = vpop.f32.mrb[33].mxu0 }
 0x5de   :  { %v4538_v26 = vadd.f32 %v1424_v53, %v4303_v1  ;;  %v3074_v44 = vpop.f32.mrb[34].mxu0 }
 0x5df   :  { %v2702_v57 = vmul.f32 -1.442695, %v4535_v15  ;;  %v4542_v61 = vadd.f32 %v3074_v44, %v4309_v0  ;;  %v1427_v14 = vpop.f32.mrb[35].mxu0 }
 0x5e0   :  { %v2700_v12 = vmul.f32 -1.442695, %v4538_v26  ;;  %v4546_v11 = vadd.f32 %v1427_v14, %v4315_v23  ;;  %v4864_v14 = vld [vmem:[#allocation18_spill] sm:$0xff] }
 0x5e1   :  { %3497 = vpow2.f32 %v2702_v57  ;;  %v2703_v24 = vmul.f32 -1.442695, %v4542_v61 }
 0x5e2   :  { %3499 = vpow2.f32 %v2700_v12  ;;  %v2701_v62 = vmul.f32 -1.442695, %v4546_v11 }
 0x5e3   :  { %v3490_v1 = vpop.eup %3489  ;;  %3501 = vpow2.f32 %v2703_v24 }
 0x5e4   :  { %v3492_v42 = vpop.eup %3491  ;;  %v1521_v46 = vadd.f32 1.0, %v3490_v1  ;;  %3503 = vpow2.f32 %v2701_v62  ;;  %v3077_v52 = vpop.f32.mrb[36].mxu0 }
 0x5e5   :  { %v3494_v0 = vpop.eup %3493  ;;  %v1519_v47 = vadd.f32 1.0, %v3492_v42  ;;  %v4551_v50 = vadd.f32 %v3077_v52, %v4328_v32  ;;  %v1440_v19 = vpop.f32.mrb[37].mxu0  ;;  %v4865_v42 = vld [vmem:[#allocation19_spill] sm:$0xff] }
 0x5e6   :  { %v3496_v23 = vpop.eup %3495  ;;  %3505 = vrcp.f32 %v1521_v46  ;;  %v1522_v49 = vadd.f32 1.0, %v3494_v0  ;;  %v4554_v27 = vadd.f32 %v1440_v19, %v4859_v51  ;;  %v3078_v9 = vpop.f32.mrb[38].mxu0 }
 0x5e7   :  { %3507 = vrcp.f32 %v1519_v47  ;;  %v1520_v36 = vadd.f32 1.0, %v3496_v23  ;;  %v2706_v13 = vmul.f32 -1.442695, %v4551_v50  ;;  %v4558_v31 = vadd.f32 %v3078_v9, %v4860_v37  ;;  %v1443_v40 = vpop.f32.mrb[39].mxu0 }
 0x5e8   :  { %3509 = vrcp.f32 %v1522_v49  ;;  %v2704_v32 = vmul.f32 -1.442695, %v4554_v27  ;;  %v4562_v16 = vadd.f32 %v1443_v40, %v4861_v21 }
 0x5e9   :  { %3511 = vrcp.f32 %v1520_v36  ;;  %v2707_v55 = vmul.f32 -1.442695, %v4558_v31 }
 0x5ea   :  { %3513 = vpow2.f32 %v2706_v13  ;;  %v2705_v56 = vmul.f32 -1.442695, %v4562_v16 }
 0x5eb   :  { %v3498_v48 = vpop.eup %3497  ;;  %3515 = vpow2.f32 %v2704_v32 }
 0x5ec   :  { %v3500_v59 = vpop.eup %3499  ;;  %v1525_v7 = vadd.f32 1.0, %v3498_v48  ;;  %3517 = vpow2.f32 %v2707_v55  ;;  %v3081_v8 = vpop.f32.mrb[40].mxu0 }
 0x5ed   :  { %v3502_v17 = vpop.eup %3501  ;;  %v1523_v29 = vadd.f32 1.0, %v3500_v59  ;;  %3519 = vpow2.f32 %v2705_v56  ;;  %v4567_v60 = vadd.f32 %v3081_v8, %v4862_v33  ;;  %v1456_v4 = vpop.f32.mrb[41].mxu0 }
 0x5ee   :  { %v3504_v39 = vpop.eup %3503  ;;  %3521 = vrcp.f32 %v1525_v7  ;;  %v1526_v22 = vadd.f32 1.0, %v3502_v17  ;;  %v4570_v28 = vadd.f32 %v1456_v4, %v4863_v63  ;;  %v3082_v53 = vpop.f32.mrb[42].mxu0 }
 0x5ef   :  { %3523 = vrcp.f32 %v1523_v29  ;;  %v1524_v44 = vadd.f32 1.0, %v3504_v39  ;;  %v2710_v57 = vmul.f32 -1.442695, %v4567_v60  ;;  %v4574_v12 = vadd.f32 %v3082_v53, %v4864_v14  ;;  %v1459_v24 = vpop.f32.mrb[43].mxu0 }
 0x5f0   :  { %v3506_v62 = vpop.eup %3505  ;;  %3525 = vrcp.f32 %v1526_v22  ;;  %v2708_v1 = vmul.f32 -1.442695, %v4570_v28  ;;  %v4578_v46 = vadd.f32 %v1459_v24, %v4865_v42 }
 0x5f1   :  { %v3508_v52 = vpop.eup %3507  ;;  %3527 = vrcp.f32 %v1524_v44  ;;  %v2711_v0 = vmul.f32 -1.442695, %v4574_v12  ;;  %v1569_v49 = vmul.f32 %v3506_v62, %v4519_v18 }
 0x5f2   :  { %v3510_v47 = vpop.eup %3509  ;;  %3529 = vpow2.f32 %v2710_v57  ;;  %v2709_v19 = vmul.f32 -1.442695, %v4578_v46  ;;  %v1567_v36 = vmul.f32 %v3508_v52, %v4522_v30 }
 0x5f3   :  { %v3512_v23 = vpop.eup %3511  ;;  %v1570_v51 = vmul.f32 %v3510_v47, %v4526_v10  ;;  %3531 = vpow2.f32 %v2708_v1 }
 0x5f4   :  { %v3514_v9 = vpop.eup %3513  ;;  %v1568_v13 = vmul.f32 %v3512_v23, %v4530_v25  ;;  %3533 = vpow2.f32 %v2711_v0 }
 0x5f5   :  { %v3516_v37 = vpop.eup %3515  ;;  %v1529_v40 = vadd.f32 1.0, %v3514_v9  ;;  %3535 = vpow2.f32 %v2709_v19  ;;  %v1584_v32 = vpack.c.bf16 %v1570_v51, %v1569_v49 }
 0x5f6   :  { %v3518_v21 = vpop.eup %3517  ;;  %v1527_v55 = vadd.f32 1.0, %v3516_v37  ;;  %v1583_v56 = vpack.c.bf16 %v1568_v13, %v1567_v36 }
 0x5f7   :  { %v3520_v48 = vpop.eup %3519  ;;  %3537 = vrcp.f32 %v1529_v40  ;;  %v1530_v59 = vadd.f32 1.0, %v3518_v21 }
 0x5f8   :  { %v3522_v18 = vpop.eup %3521  ;;  %3539 = vrcp.f32 %v1527_v55  ;;  %v1528_v10 = vadd.f32 1.0, %v3520_v48  ;;  %3083 = vmatprep.subr.bf16.mxu0 %v1583_v56 }
 0x5f9   :  { %v3524_v7 = vpop.eup %3523  ;;  %3541 = vrcp.f32 %v1530_v59  ;;  %3084 = vmatpush3.bf16.msra.mxu0 %v1583_v56  ;;  %v1573_v8 = vmul.f32 %v3522_v18, %v4535_v15 }
 0x5fa   :  { %v3526_v30 = vpop.eup %3525  ;;  %3543 = vrcp.f32 %v1528_v10  ;;  %3085 = vmatprep.subr.bf16.mxu0 %v1584_v32  ;;  %v1571_v33 = vmul.f32 %v3524_v7, %v4538_v26 }
 0x5fb   :  { %v3528_v25 = vpop.eup %3527  ;;  %v1574_v17 = vmul.f32 %v3526_v30, %v4542_v61 }
 0x5fc   :  { %v3530_v29 = vpop.eup %3529  ;;  %v1572_v4 = vmul.f32 %v3528_v25, %v4546_v11 }
 0x5fd   :  { %v3532_v39 = vpop.eup %3531  ;;  %v1533_v22 = vadd.f32 1.0, %v3530_v29  ;;  %3086 = vmatpush3.bf16.msra.mxu0 %v1584_v32  ;;  %v1586_v63 = vpack.c.bf16 %v1574_v17, %v1573_v8 }
 0x5fe   :  { %v3534_v53 = vpop.eup %3533  ;;  %v1531_v44 = vadd.f32 1.0, %v3532_v39  ;;  %v1585_v57 = vpack.c.bf16 %v1572_v4, %v1571_v33 }
 0x5ff   :  { %v3536_v14 = vpop.eup %3535  ;;  %3545 = vrcp.f32 %v1533_v22  ;;  %v1534_v24 = vadd.f32 1.0, %v3534_v53  ;;  %v3273_v22 = vld [vmem:[%s4793_s14] sm:$0xff]   ;;  %v3275_v53 = vld [vmem:[%s4793_s14 + $0x10] sm:$0xff]  }
 0x600   :  { %3547 = vrcp.f32 %v1531_v44  ;;  %v1532_v62 = vadd.f32 1.0, %v3536_v14  ;;  %3087 = vmatprep.subr.bf16.mxu0 %v1585_v57  ;;  %v3276_v44 = vld [vmem:[%s4793_s14 + $0x18] sm:$0xff]   ;;  %v3278_v14 = vld [vmem:[%s4793_s14 + $0x28] sm:$0xff]  }
 0x601   :  { %v3538_v15 = vpop.eup %3537  ;;  %3549 = vrcp.f32 %v1534_v24  ;;  %3088 = vmatpush3.bf16.msra.mxu0 %v1585_v57  ;;  %v3277_v57 = vld [vmem:[%s4793_s14 + $0x20] sm:$0xff]   ;;  %v3279_v24 = vld [vmem:[%s4793_s14 + $0x30] sm:$0xff]  }
 0x602   :  { %v3540_v61 = vpop.eup %3539  ;;  %3551 = vrcp.f32 %v1532_v62  ;;  %3089 = vmatprep.subr.bf16.mxu0 %v1586_v63  ;;  %v1577_v1 = vmul.f32 %v3538_v15, %v4551_v50  ;;  %v3280_v62 = vld [vmem:[%s4793_s14 + $0x38] sm:$0xff]   ;;  %v4870_v15 = vmov 0.0  }
 0x603   :  { %v3542_v26 = vpop.eup %3541  ;;  %v1575_v52 = vmul.f32 %v3540_v61, %v4554_v27  ;;  %v2737_v61 = vld [vmem:[%s4792_s13 + $0x1] ss:$0 sm:$0xff] }
 0x604   :  { %v3544_v11 = vpop.eup %3543  ;;  %v1578_v42 = vmul.f32 %v3542_v26, %v4558_v31 }
 0x605   :  { %v1576_v0 = vmul.f32 %v3544_v11, %v4562_v16  ;;  %3090 = vmatpush3.bf16.msra.mxu0 %v1586_v63  ;;  %v3274_v63 = vld [vmem:[%s4793_s14 + $0x8] sm:$0xff]  }
 0x606   :  { %v1588_v47 = vpack.c.bf16 %v1578_v42, %v1577_v1 }
 0x607   :  { %v1587_v19 = vpack.c.bf16 %v1576_v0, %v1575_v52 }
 0x609   :  { %v3546_v23 = vpop.eup %3545  ;;  %3091 = vmatprep.subr.bf16.mxu0 %v1587_v19 }
 0x60a   :  { %v3548_v49 = vpop.eup %3547  ;;  %3092 = vmatpush3.bf16.msra.mxu0 %v1587_v19  ;;  %v1581_v36 = vmul.f32 %v3546_v23, %v4567_v60  ;;  %v4866_v60 = vld [vmem:[#allocation9_spill] sm:$0xff] }
 0x60b   :  { %v3550_v51 = vpop.eup %3549  ;;  %3093 = vmatprep.subr.bf16.mxu0 %v1588_v47  ;;  %v1579_v31 = vmul.f32 %v3548_v49, %v4570_v28  ;;  %v3270_v28 = vld [vmem:[%s4791_s12 + $0x70] sm:$0xff]  }
 0x60c   :  { %v3552_v9 = vpop.eup %3551  ;;  %v1582_v50 = vmul.f32 %v3550_v51, %v4574_v12  ;;  %3119 = vmatprep.subr.bf16.mxu1 %v3270_v28  ;;  %v4869_v12 = vld [vmem:[#allocation12_spill] sm:$0xff] }
 0x60d   :  { %v1580_v27 = vmul.f32 %v3552_v9, %v4578_v46  ;;  %3120 = vmatpush3.bf16.msra.mxu1 %v3270_v28 }
 0x60e   :  { %3094 = vmatpush3.bf16.msra.mxu0 %v1588_v47  ;;  %v1590_v16 = vpack.c.bf16 %v1582_v50, %v1581_v36  ;;  %3121 = vmatprep.subr.bf16.mxu1 %v3271_v5 }
 0x60f   :  { %v1589_v13 = vpack.c.bf16 %v1580_v27, %v1579_v31 }
 0x611   :  { %3095 = vmatprep.subr.bf16.mxu0 %v1589_v13  ;;  %3122 = vmatpush3.bf16.msra.mxu1 %v3271_v5 }
 0x612   :  { %3096 = vmatpush3.bf16.msra.mxu0 %v1589_v13 }
 0x613   :  { %3097 = vmatprep.subr.bf16.mxu0 %v1590_v16 }
 0x616   :  { %3098 = vmatpush3.bf16.msra.mxu0 %v1590_v16 }
 0x617   :  { %3131 = vmatprep.subr.bf16.mxu0 %v3272_v35 }
 0x619   :  { %3100 = vmatmul.mubr.msk.bf16.vlgmr.msra.gmra.mrb[44].mxu0 %vm4407_vm15, %v4856_v34 }
 0x61a   :  { %3103 = vmatprep.mubr.msk.bf16.mxu0 %vm4411_vm4, %v4856_v34  ;;  %3132 = vmatpush3.bf16.msra.mxu0 %v3272_v35 }
 0x61b   :  { %3141 = vmatprep.subr.bf16.mxu0 %v3273_v22 }
 0x621   :  { %3104 = vmatmul.mubr.msk.bf16.gmra.mrb[48].mxu0 %vm4425_vm7, %v4856_v34  ;;  %v4867_v34 = vld [vmem:[#allocation10_spill] sm:$0xff] }
 0x622   :  { %3133 = vmatprep.mubr.msk.bf16.mxu0 %vm430_vm13, %v4866_v60 }
 0x629   :  { %3134 = vmatmul.mubr.msk.bf16.vlgmr.msra.gmra.mrb[52].mxu0 %vm430_vm13, %v4867_v34 }
 0x62a   :  { %3137 = vmatprep.mubr.msk.bf16.mxu0 %vm430_vm13, %v4868_v6  ;;  %3142 = vmatpush3.bf16.msra.mxu0 %v3273_v22 }
 0x62b   :  { %3143 = vmatprep.subr.bf16.mxu0 %v3274_v63 }
 0x62e   :  { %3144 = vmatpush3.bf16.msra.mxu0 %v3274_v63 }
 0x62f   :  { %3145 = vmatprep.subr.bf16.mxu0 %v3275_v53 }
 0x631   :  { %3138 = vmatmul.mubr.msk.bf16.gmra.mrb[56].mxu0 %vm430_vm13, %v4869_v12 }
 0x632   :  { %3146 = vmatpush3.bf16.msra.mxu0 %v3275_v53 }
 0x633   :  { %3147 = vmatprep.subr.bf16.mxu0 %v3276_v44 }
 0x636   :  { %3148 = vmatpush3.bf16.msra.mxu0 %v3276_v44 }
 0x637   :  { %3149 = vmatprep.subr.bf16.mxu0 %v3277_v57 }
 0x63a   :  { %3150 = vmatpush3.bf16.msra.mxu0 %v3277_v57 }
 0x63b   :  { %3151 = vmatprep.subr.bf16.mxu0 %v3278_v14 }
 0x63e   :  { %3152 = vmatpush3.bf16.msra.mxu0 %v3278_v14 }
 0x63f   :  { %3153 = vmatprep.subr.bf16.mxu0 %v3279_v24 }
 0x642   :  { %3154 = vmatpush3.bf16.msra.mxu0 %v3279_v24 }
 0x643   :  { %3155 = vmatprep.subr.bf16.mxu0 %v3280_v62 }
 0x646   :  { %3156 = vmatpush3.bf16.msra.mxu0 %v3280_v62 }
 0x647   :  { %3189 = vmatprep.subr.bf16.mxu0 %v4870_v15 }
 0x6ec   :  { %v3101_v46 = vpop.f32.mrb[44].mxu0 }
 0x6ed   :  { %v1625_v37 = vpop.f32.mrb[45].mxu0  ;;  %v1658_v32 = vadd.f32 %v3101_v46, %v4461_v20 }
 0x6ee   :  { %v3102_v40 = vpop.f32.mrb[46].mxu0  ;;  %v1656_v56 = vadd.f32 %v1625_v37, %v4452_v43 }
 0x6ef   :  { %v1659_v21 = vadd.f32 %v3102_v40, %v4455_v54  ;;  %v1628_v55 = vpop.f32.mrb[47].mxu0 }
 0x6f0   :  { %v1657_v48 = vadd.f32 %v1628_v55, %v4458_v38 }
 0x6f1   :  { %v1682_v59 = vpack.c.bf16 %v1659_v21, %v1658_v32 }
 0x6f2   :  { %v1681_v18 = vpack.c.bf16 %v1657_v48, %v1656_v56 }
 0x6f4   :  { %v3105_v10 = vpop.f32.mrb[48].mxu0  ;;  %3123 = vmatprep.mubr.bf16.mxu1 %v1681_v18 }
 0x6f5   :  { %v1641_v7 = vpop.f32.mrb[49].mxu0  ;;  %3124 = vmatmul.mubr.bf16.vlgmr.msra.gmra.mrb[32].mxu1 %v1682_v59  ;;  %v1662_v25 = vadd.f32 %v3105_v10, %v4477_v3 }
 0x6f6   :  { %v3106_v30 = vpop.f32.mrb[50].mxu0  ;;  %v1660_v29 = vadd.f32 %v1641_v7, %v4468_v2 }
 0x6f7   :  { %v1663_v8 = vadd.f32 %v3106_v30, %v4471_v41  ;;  %v1644_v17 = vpop.f32.mrb[51].mxu0 }
 0x6f8   :  { %v1661_v33 = vadd.f32 %v1644_v17, %v4474_v45 }
 0x6f9   :  { %v1684_v4 = vpack.c.bf16 %v1663_v8, %v1662_v25 }
 0x6fa   :  { %v1683_v39 = vpack.c.bf16 %v1661_v33, %v1660_v29 }
 0x6fc   :  { %3127 = vmatprep.mubr.bf16.mxu1 %v1683_v39 }
 0x6fd   :  { %3128 = vmatmul.mubr.bf16.gmra.mrb[36].mxu1 %v1684_v4 }
 0x7c8   :  { %v3125_v26 = vpop.f32.mrb[32].mxu1 }
 0x7c9   :  { %v1784_v11 = vadd.f32 %v3125_v26, %v2737_v61  ;;  %v1775_v1 = vpop.f32.mrb[33].mxu1 }
 0x7ca   :  { %v1776_v42 = vadd.f32 %v2737_v61, %v1775_v1  ;;  %v3126_v52 = vpop.f32.mrb[34].mxu1 }
 0x7cb   :  { %v2748_v0 = vmul.f32 -1.442695, %v1784_v11  ;;  %v1787_v47 = vadd.f32 %v3126_v52, %v2737_v61  ;;  %v1778_v19 = vpop.f32.mrb[35].mxu1 }
 0x7cc   :  { %v2746_v23 = vmul.f32 -1.442695, %v1776_v42  ;;  %v1779_v49 = vadd.f32 %v2737_v61, %v1778_v19 }
 0x7cd   :  { %3553 = vpow2.f32 %v2748_v0  ;;  %v2749_v51 = vmul.f32 -1.442695, %v1787_v47 }
 0x7ce   :  { %3555 = vpow2.f32 %v2746_v23  ;;  %v2747_v9 = vmul.f32 -1.442695, %v1779_v49 }
 0x7cf   :  { %3557 = vpow2.f32 %v2749_v51  ;;  %v3281_v51 = vld [vmem:[%s4796_s17] sm:$0xff]  }
 0x7d0   :  { %3559 = vpow2.f32 %v2747_v9  ;;  %v3129_v36 = vpop.f32.mrb[36].mxu1  ;;  %3165 = vmatprep.subr.bf16.mxu1 %v3281_v51  ;;  %v3286_v9 = vld [vmem:[%s4796_s17 + $0x28] sm:$0xff]  }
 0x7d1   :  { %v1800_v50 = vadd.f32 %v3129_v36, %v2737_v61  ;;  %v1791_v31 = vpop.f32.mrb[37].mxu1  ;;  %3166 = vmatpush3.bf16.msra.mxu1 %v3281_v51  ;;  %v3287_v36 = vld [vmem:[%s4796_s17 + $0x30] sm:$0xff]  }
 0x7d2   :  { %v1792_v27 = vadd.f32 %v2737_v61, %v1791_v31  ;;  %v3130_v16 = vpop.f32.mrb[38].mxu1  ;;  %v2767_v31 = vld [vmem:[%s4795_s16] ss:$0 sm:$0xff] }
 0x7d3   :  { %v2752_v13 = vmul.f32 -1.442695, %v1800_v50  ;;  %v1803_v60 = vadd.f32 %v3130_v16, %v2737_v61  ;;  %v1794_v28 = vpop.f32.mrb[39].mxu1 }
 0x7d4   :  { %v2750_v5 = vmul.f32 -1.442695, %v1792_v27  ;;  %v1795_v35 = vadd.f32 %v2737_v61, %v1794_v28 }
 0x7d5   :  { %3561 = vpow2.f32 %v2752_v13  ;;  %v2753_v34 = vmul.f32 -1.442695, %v1803_v60 }
 0x7d6   :  { %3563 = vpow2.f32 %v2750_v5  ;;  %v2751_v6 = vmul.f32 -1.442695, %v1795_v35 }
 0x7d7   :  { %v3554_v12 = vpop.eup %3553  ;;  %3565 = vpow2.f32 %v2753_v34 }
 0x7d8   :  { %v3556_v46 = vpop.eup %3555  ;;  %v1832_v37 = vadd.f32 1.0, %v3554_v12  ;;  %3567 = vpow2.f32 %v2751_v6 }
 0x7d9   :  { %v3558_v40 = vpop.eup %3557  ;;  %v1830_v32 = vadd.f32 1.0, %v3556_v46 }
 0x7da   :  { %v3560_v21 = vpop.eup %3559  ;;  %3569 = vrcp.f32 %v1832_v37  ;;  %v1833_v55 = vadd.f32 1.0, %v3558_v40 }
 0x7db   :  { %3571 = vrcp.f32 %v1830_v32  ;;  %v1831_v56 = vadd.f32 1.0, %v3560_v21 }
 0x7dc   :  { %3573 = vrcp.f32 %v1833_v55 }
 0x7dd   :  { %3575 = vrcp.f32 %v1831_v56 }
 0x7df   :  { %v3562_v48 = vpop.eup %3561 }
 0x7e0   :  { %v3564_v59 = vpop.eup %3563  ;;  %v1836_v18 = vadd.f32 1.0, %v3562_v48 }
 0x7e1   :  { %v3566_v10 = vpop.eup %3565  ;;  %v1834_v7 = vadd.f32 1.0, %v3564_v59 }
 0x7e2   :  { %v3568_v30 = vpop.eup %3567  ;;  %3577 = vrcp.f32 %v1836_v18  ;;  %v1837_v25 = vadd.f32 1.0, %v3566_v10 }
 0x7e3   :  { %3579 = vrcp.f32 %v1834_v7  ;;  %v1835_v8 = vadd.f32 1.0, %v3568_v30 }
 0x7e4   :  { %v3570_v17 = vpop.eup %3569  ;;  %3581 = vrcp.f32 %v1837_v25 }
 0x7e5   :  { %v3572_v29 = vpop.eup %3571  ;;  %v1856_v33 = vmul.f32 %v3570_v17, %v1784_v11  ;;  %3583 = vrcp.f32 %v1835_v8 }
 0x7e6   :  { %v3574_v4 = vpop.eup %3573  ;;  %v1854_v39 = vmul.f32 %v3572_v29, %v1776_v42 }
 0x7e7   :  { %v3576_v22 = vpop.eup %3575  ;;  %v1857_v63 = vmul.f32 %v3574_v4, %v1787_v47  ;;  %v1864_v44 = vadd.f32 %v1856_v33, %v4461_v20 }
 0x7e8   :  { %v1855_v53 = vmul.f32 %v3576_v22, %v1779_v49  ;;  %v1862_v14 = vadd.f32 %v1854_v39, %v4452_v43 }
 0x7e9   :  { %v1865_v57 = vadd.f32 %v1857_v63, %v4455_v54 }
 0x7ea   :  { %v1863_v24 = vadd.f32 %v1855_v53, %v4458_v38 }
 0x7eb   :  { %v1887_v62 = vpack.c.bf16 %v1865_v57, %v1864_v44 }
 0x7ec   :  { %v3578_v61 = vpop.eup %3577  ;;  %v1886_v26 = vpack.c.bf16 %v1863_v24, %v1862_v14 }
 0x7ed   :  { %v3580_v1 = vpop.eup %3579  ;;  %v1860_v52 = vmul.f32 %v3578_v61, %v1800_v50  ;;  %v3288_v50 = vld [vmem:[%s4796_s17 + $0x38] sm:$0xff]  }
 0x7ee   :  { %v3582_v11 = vpop.eup %3581  ;;  %v1858_v0 = vmul.f32 %v3580_v1, %v1792_v27  ;;  %3157 = vmatprep.mubr.bf16.mxu0 %v1886_v26 }
 0x7ef   :  { %v3584_v42 = vpop.eup %3583  ;;  %v1861_v19 = vmul.f32 %v3582_v11, %v1803_v60  ;;  %3158 = vmatmul.mubr.bf16.vlgmr.msra.gmra.mrb[52].mxu0 %v1887_v62  ;;  %v1868_v20 = vadd.f32 %v1860_v52, %v4477_v3  ;;  %v3285_v3 = vld [vmem:[%s4796_s17 + $0x20] sm:$0xff]  }
 0x7f0   :  { %v1859_v47 = vmul.f32 %v3584_v42, %v1795_v35  ;;  %v1866_v43 = vadd.f32 %v1858_v0, %v4468_v2  ;;  %v3283_v2 = vld [vmem:[%s4796_s17 + $0x10] sm:$0xff]  }
 0x7f1   :  { %v1869_v54 = vadd.f32 %v1861_v19, %v4471_v41  ;;  %v3282_v41 = vld [vmem:[%s4796_s17 + $0x8] sm:$0xff]  }
 0x7f2   :  { %v1867_v38 = vadd.f32 %v1859_v47, %v4474_v45  ;;  %3167 = vmatprep.subr.bf16.mxu1 %v3282_v41  ;;  %v3284_v45 = vld [vmem:[%s4796_s17 + $0x18] sm:$0xff]  }
 0x7f3   :  { %v1889_v23 = vpack.c.bf16 %v1869_v54, %v1868_v20  ;;  %3168 = vmatpush3.bf16.msra.mxu1 %v3282_v41 }
 0x7f4   :  { %v1888_v49 = vpack.c.bf16 %v1867_v38, %v1866_v43  ;;  %3169 = vmatprep.subr.bf16.mxu1 %v3283_v2 }
 0x7f6   :  { %3161 = vmatprep.mubr.bf16.mxu0 %v1888_v49 }
 0x7f7   :  { %3162 = vmatmul.mubr.bf16.gmra.mrb[56].mxu0 %v1889_v23  ;;  %3170 = vmatpush3.bf16.msra.mxu1 %v3283_v2 }
 0x7f8   :  { %3197 = vmatprep.mubr.msk.bf16.mxu0 %vm3702_vm1, %v4870_v15  ;;  %3171 = vmatprep.subr.bf16.mxu1 %v3284_v45 }
 0x7fb   :  { %3172 = vmatpush3.bf16.msra.mxu1 %v3284_v45 }
 0x7fc   :  { %3173 = vmatprep.subr.bf16.mxu1 %v3285_v3 }
 0x7ff   :  { %3174 = vmatpush3.bf16.msra.mxu1 %v3285_v3 }
 0x800   :  { %3175 = vmatprep.subr.bf16.mxu1 %v3286_v9 }
 0x803   :  { %3176 = vmatpush3.bf16.msra.mxu1 %v3286_v9 }
 0x804   :  { %3177 = vmatprep.subr.bf16.mxu1 %v3287_v36 }
 0x807   :  { %3178 = vmatpush3.bf16.msra.mxu1 %v3287_v36 }
 0x808   :  { %3179 = vmatprep.subr.bf16.mxu1 %v3288_v50 }
 0x80b   :  { %3180 = vmatpush3.bf16.msra.mxu1 %v3288_v50  ;;  %v3289_v50 = vld [vmem:[%s4798_s19] sm:$0xff]  }
 0x80c   :  { %3207 = vmatprep.subr.bf16.mxu1 %v4870_v15 }
 0x8c2   :  { %v3159_v27 = vpop.f32.mrb[52].mxu0 }
 0x8c3   :  { %v2085_v16 = vadd.f32 %v3159_v27, %v2767_v31  ;;  %v2045_v13 = vpop.f32.mrb[53].mxu0  ;;  %v3291_v27 = vld [vmem:[%s4798_s19 + $0x10] sm:$0xff]  }
 0x8c4   :  { %v2083_v60 = vadd.f32 %v2767_v31, %v2045_v13  ;;  %v3160_v28 = vpop.f32.mrb[54].mxu0  ;;  %v3293_v13 = vld [vmem:[%s4798_s19 + $0x20] sm:$0xff]  }
 0x8c5   :  { %v2770_v5 = vmul.f32 -1.442695, %v2085_v16  ;;  %v2086_v35 = vadd.f32 %v3160_v28, %v2767_v31  ;;  %v2048_v34 = vpop.f32.mrb[55].mxu0  ;;  %v3295_v28 = vld [vmem:[%s4798_s19 + $0x30] sm:$0xff]  }
 0x8c6   :  { %v2768_v6 = vmul.f32 -1.442695, %v2083_v60  ;;  %v2084_v12 = vadd.f32 %v2767_v31, %v2048_v34 }
 0x8c7   :  { %3585 = vpow2.f32 %v2770_v5  ;;  %v2771_v46 = vmul.f32 -1.442695, %v2086_v35  ;;  %v2776_v5 = vld [vmem:[%s4797_s18] ss:$0 sm:$0xff] }
 0x8c8   :  { %3587 = vpow2.f32 %v2768_v6  ;;  %v2769_v37 = vmul.f32 -1.442695, %v2084_v12 }
 0x8c9   :  { %3589 = vpow2.f32 %v2771_v46 }
 0x8ca   :  { %3591 = vpow2.f32 %v2769_v37  ;;  %v3163_v40 = vpop.f32.mrb[56].mxu0 }
 0x8cb   :  { %v2089_v32 = vadd.f32 %v3163_v40, %v2767_v31  ;;  %v2061_v21 = vpop.f32.mrb[57].mxu0 }
 0x8cc   :  { %v2087_v55 = vadd.f32 %v2767_v31, %v2061_v21  ;;  %v3164_v56 = vpop.f32.mrb[58].mxu0 }
 0x8cd   :  { %v2774_v48 = vmul.f32 -1.442695, %v2089_v32  ;;  %v2090_v59 = vadd.f32 %v3164_v56, %v2767_v31  ;;  %v2064_v18 = vpop.f32.mrb[59].mxu0 }
 0x8ce   :  { %v2772_v10 = vmul.f32 -1.442695, %v2087_v55  ;;  %v2088_v7 = vadd.f32 %v2767_v31, %v2064_v18  ;;  %v3290_v31 = vld [vmem:[%s4798_s19 + $0x8] sm:$0xff]  }
 0x8cf   :  { %3593 = vpow2.f32 %v2774_v48  ;;  %v2775_v30 = vmul.f32 -1.442695, %v2090_v59 }
 0x8d0   :  { %3595 = vpow2.f32 %v2772_v10  ;;  %v2773_v25 = vmul.f32 -1.442695, %v2088_v7 }
 0x8d1   :  { %v3586_v8 = vpop.eup %3585  ;;  %3597 = vpow2.f32 %v2775_v30 }
 0x8d2   :  { %v3588_v17 = vpop.eup %3587  ;;  %v2117_v29 = vadd.f32 1.0, %v3586_v8  ;;  %3599 = vpow2.f32 %v2773_v25 }
 0x8d3   :  { %v3590_v33 = vpop.eup %3589  ;;  %v2115_v4 = vadd.f32 1.0, %v3588_v17 }
 0x8d4   :  { %v3592_v39 = vpop.eup %3591  ;;  %3601 = vrcp.f32 %v2117_v29  ;;  %v2118_v22 = vadd.f32 1.0, %v3590_v33 }
 0x8d5   :  { %3603 = vrcp.f32 %v2115_v4  ;;  %v2116_v63 = vadd.f32 1.0, %v3592_v39 }
 0x8d6   :  { %3605 = vrcp.f32 %v2118_v22 }
 0x8d7   :  { %3607 = vrcp.f32 %v2116_v63 }
 0x8d9   :  { %v3594_v53 = vpop.eup %3593 }
 0x8da   :  { %v3596_v44 = vpop.eup %3595  ;;  %v2121_v57 = vadd.f32 1.0, %v3594_v53 }
 0x8db   :  { %v3598_v14 = vpop.eup %3597  ;;  %v2119_v24 = vadd.f32 1.0, %v3596_v44 }
 0x8dc   :  { %v3600_v62 = vpop.eup %3599  ;;  %3609 = vrcp.f32 %v2121_v57  ;;  %v2122_v61 = vadd.f32 1.0, %v3598_v14 }
 0x8dd   :  { %3611 = vrcp.f32 %v2119_v24  ;;  %v2120_v26 = vadd.f32 1.0, %v3600_v62 }
 0x8de   :  { %v3602_v1 = vpop.eup %3601  ;;  %3613 = vrcp.f32 %v2122_v61 }
 0x8df   :  { %v3604_v52 = vpop.eup %3603  ;;  %v2141_v11 = vmul.f32 %v3602_v1, %v2085_v16  ;;  %3615 = vrcp.f32 %v2120_v26  ;;  %v3292_v16 = vld [vmem:[%s4798_s19 + $0x18] sm:$0xff]  }
 0x8e0   :  { %v3606_v0 = vpop.eup %3605  ;;  %v2139_v42 = vmul.f32 %v3604_v52, %v2083_v60  ;;  %v3294_v60 = vld [vmem:[%s4798_s19 + $0x28] sm:$0xff]  }
 0x8e1   :  { %v3608_v19 = vpop.eup %3607  ;;  %2149 = vst [vmem:[#allocation2 + $0x10] sm:$0xff] %v2141_v11  ;;  %v2142_v47 = vmul.f32 %v3606_v0, %v2086_v35 }
 0x8e2   :  { %2147 = vst [vmem:[#allocation2] sm:$0xff] %v2139_v42  ;;  %v2140_v20 = vmul.f32 %v3608_v19, %v2084_v12 }
 0x8e3   :  { %2150 = vst [vmem:[#allocation2 + $0x18] sm:$0xff] %v2142_v47  ;;  %v2172_v54 = vpack.c.bf16 %v2142_v47, %v2141_v11 }
 0x8e4   :  { %2148 = vst [vmem:[#allocation2 + $0x8] sm:$0xff] %v2140_v20  ;;  %v2171_v43 = vpack.c.bf16 %v2140_v20, %v2139_v42 }
 0x8e6   :  { %v3610_v38 = vpop.eup %3609  ;;  %3181 = vmatprep.mubr.bf16.mxu1 %v2171_v43 }
 0x8e7   :  { %v3612_v23 = vpop.eup %3611  ;;  %v2145_v49 = vmul.f32 %v3610_v38, %v2089_v32  ;;  %3182 = vmatmul.mubr.bf16.vlgmr.msra.gmra.mrb[40].mxu1 %v2172_v54 }
 0x8e8   :  { %v3614_v51 = vpop.eup %3613  ;;  %v2143_v41 = vmul.f32 %v3612_v23, %v2087_v55  ;;  %3208 = vmatpush3.bf16.msra.mxu1 %v3289_v50 }
 0x8e9   :  { %v3616_v2 = vpop.eup %3615  ;;  %2153 = vst [vmem:[#allocation2 + $0x30] sm:$0xff] %v2145_v49  ;;  %v2146_v45 = vmul.f32 %v3614_v51, %v2090_v59  ;;  %3209 = vmatprep.subr.bf16.mxu1 %v4870_v15 }
 0x8ea   :  { %2151 = vst [vmem:[#allocation2 + $0x20] sm:$0xff] %v2143_v41  ;;  %v2144_v3 = vmul.f32 %v3616_v2, %v2088_v7 }
 0x8eb   :  { %2154 = vst [vmem:[#allocation2 + $0x38] sm:$0xff] %v2146_v45  ;;  %v2174_v9 = vpack.c.bf16 %v2146_v45, %v2145_v49 }
 0x8ec   :  { %2152 = vst [vmem:[#allocation2 + $0x28] sm:$0xff] %v2144_v3  ;;  %v2173_v36 = vpack.c.bf16 %v2144_v3, %v2143_v41  ;;  %3210 = vmatpush3.bf16.msra.mxu1 %v3290_v31 }
 0x8ed   :  { %3211 = vmatprep.subr.bf16.mxu1 %v4870_v15 }
 0x8ee   :  { %3185 = vmatprep.mubr.bf16.mxu1 %v2173_v36  ;;  %v2594_v36 = vld [vmem:[%s4871_s5] ss:$0 sm:$0xff] }
 0x8ef   :  { %3186 = vmatmul.mubr.bf16.gmra.mrb[44].mxu1 %v2174_v9  ;;  %vm221_vm13 = vcmp.eq.s32.totalorder %v4158_v58, %v2594_v36  ;;  %v4872_v58 = vld [vmem:[#allocation8_spill] sm:$0xff] }
 0x8f0   :  { %3223 = vmatprep.mubr.msk.bf16.mxu1 %vm3702_vm1, %v4870_v15  ;;  %3212 = vmatpush3.bf16.msra.mxu1 %v3291_v27 }
 0x8f1   :  { %3213 = vmatprep.subr.bf16.mxu1 %v4870_v15 }
 0x8f4   :  { %3214 = vmatpush3.bf16.msra.mxu1 %v3292_v16 }
 0x8f5   :  { %3215 = vmatprep.subr.bf16.mxu1 %v4870_v15 }
 0x8f8   :  { %3216 = vmatpush3.bf16.msra.mxu1 %v3293_v13 }
 0x8f9   :  { %3217 = vmatprep.subr.bf16.mxu1 %v4870_v15 }
 0x8fc   :  { %3218 = vmatpush3.bf16.msra.mxu1 %v3294_v60 }
 0x8fd   :  { %3219 = vmatprep.subr.bf16.mxu1 %v4870_v15 }
 0x900   :  { %3220 = vmatpush3.bf16.msra.mxu1 %v3295_v28 }
 0x901   :  { %3221 = vmatprep.subr.bf16.mxu1 %v4870_v15 }
 0x9ba   :  { %v3183_v35 = vpop.f32.mrb[40].mxu1 }
 0x9bb   :  { %v2273_v34 = vadd.f32 %v3183_v35, %v2776_v5  ;;  %v2264_v6 = vpop.f32.mrb[41].mxu1  ;;  %v2415_v35 = vld [vmem:[%s4799_s20] sm:$0xf]  ;;  %s3705_s20 = smov [#allocation2]  }
 0x9bc   :  { %v2265_v12 = vadd.f32 %v2776_v5, %v2264_v6  ;;  %v3184_v46 = vpop.f32.mrb[42].mxu1  ;;  %v2417_v6 = vsel %vm291_vm0, %v2415_v35, 0  ;;  %s2568_s7 = sshll.u32 %s3705_s20, 4  ;;  %s2569_s7 = int_to_ptr.vmem [resolvable:$true] %s2568_s7 }
 0x9bd   :  { %v2787_v37 = vmul.f32 -1.442695, %v2273_v34  ;;  %v2276_v40 = vadd.f32 %v3184_v46, %v2776_v5  ;;  %v2267_v32 = vpop.f32.mrb[43].mxu1  ;;  %s3653_s28 = scalar_lea.vmem %s2569_s7, 1024  ;;  %p3658_p1 = scmp.lt.s32.totalorder %s2569_s7, %s2569_s7 }
 0x9be   :  { %v2785_v21 = vmul.f32 -1.442695, %v2265_v12  ;;  %v2268_v55 = vadd.f32 %v2776_v5, %v2267_v32  ;;  %p3654_p0 = scmp.ne.s32.totalorder %s2569_s7, %s3653_s28  ;;  %p3659_p2 = scmp.lt.s32.totalorder %s3653_s28, %s3653_s28 }
 0x9bf   :  { %3617 = vpow2.f32 %v2787_v37  ;;  %v2788_v56 = vmul.f32 -1.442695, %v2276_v40 }
 0x9c0   :  { %3619 = vpow2.f32 %v2785_v21  ;;  %v2786_v48 = vmul.f32 -1.442695, %v2268_v55  ;;  %p3660_p3 = por %p3659_p2, %p3658_p1 }
 0x9c1   :  { %3621 = vpow2.f32 %v2788_v56 }
 0x9c2   :  { %3623 = vpow2.f32 %v2786_v48  ;;  %v3187_v59 = vpop.f32.mrb[44].mxu1  ;;  %p3661_p4 = pnand %p3660_p3, %p3654_p0 }
 0x9c3   :  { %v2289_v18 = vadd.f32 %v3187_v59, %v2776_v5  ;;  %v2280_v10 = vpop.f32.mrb[45].mxu1 }
 0x9c4   :  { %v2281_v7 = vadd.f32 %v2776_v5, %v2280_v10  ;;  %v3188_v30 = vpop.f32.mrb[46].mxu1 }
 0x9c5   :  { %v2791_v25 = vmul.f32 -1.442695, %v2289_v18  ;;  %v2292_v8 = vadd.f32 %v3188_v30, %v2776_v5  ;;  %v2283_v17 = vpop.f32.mrb[47].mxu1 }
 0x9c6   :  { %v2789_v29 = vmul.f32 -1.442695, %v2281_v7  ;;  %v2284_v33 = vadd.f32 %v2776_v5, %v2283_v17  ;;  %v222_v5 = vsel %vm221_vm13, 1.0, %v4870_v15 }
 0x9c7   :  { %3625 = vpow2.f32 %v2791_v25  ;;  %v2792_v4 = vmul.f32 -1.442695, %v2292_v8 }
 0x9c8   :  { %3627 = vpow2.f32 %v2789_v29  ;;  %v2790_v39 = vmul.f32 -1.442695, %v2284_v33 }
 0x9c9   :  { %v3618_v22 = vpop.eup %3617  ;;  %3629 = vpow2.f32 %v2792_v4 }
 0x9ca   :  { %v3620_v63 = vpop.eup %3619  ;;  %v2321_v53 = vadd.f32 1.0, %v3618_v22  ;;  %3631 = vpow2.f32 %v2790_v39 }
 0x9cb   :  { %v3622_v44 = vpop.eup %3621  ;;  %v2319_v57 = vadd.f32 1.0, %v3620_v63 }
 0x9cc   :  { %v3624_v14 = vpop.eup %3623  ;;  %3633 = vrcp.f32 %v2321_v53  ;;  %v2322_v24 = vadd.f32 1.0, %v3622_v44 }
 0x9cd   :  { %3635 = vrcp.f32 %v2319_v57  ;;  %v2320_v62 = vadd.f32 1.0, %v3624_v14 }
 0x9ce   :  { %3637 = vrcp.f32 %v2322_v24 }
 0x9cf   :  { %3639 = vrcp.f32 %v2320_v62 }
 0x9d1   :  { %v3626_v61 = vpop.eup %3625 }
 0x9d2   :  { %v3628_v26 = vpop.eup %3627  ;;  %v2325_v1 = vadd.f32 1.0, %v3626_v61 }
 0x9d3   :  { %v3630_v52 = vpop.eup %3629  ;;  %v2323_v11 = vadd.f32 1.0, %v3628_v26 }
 0x9d4   :  { %v3632_v0 = vpop.eup %3631  ;;  %3641 = vrcp.f32 %v2325_v1  ;;  %v2326_v42 = vadd.f32 1.0, %v3630_v52 }
 0x9d5   :  { %3643 = vrcp.f32 %v2323_v11  ;;  %v2324_v19 = vadd.f32 1.0, %v3632_v0 }
 0x9d6   :  { %v3634_v47 = vpop.eup %3633  ;;  %3645 = vrcp.f32 %v2326_v42 }
 0x9d7   :  { %v3636_v20 = vpop.eup %3635  ;;  %3647 = vrcp.f32 %v2324_v19  ;;  %v2345_v38 = vmul.f32 %v3634_v47, %v2273_v34  ;;  %v223_v34 = vpack.c.bf16 %v222_v5, %v222_v5 }
 0x9d8   :  { %v3638_v54 = vpop.eup %3637  ;;  %v2343_v49 = vmul.f32 %v3636_v20, %v2265_v12  ;;  %v3296_v12 = vld [vmem:[%s4798_s19 + $0x38] sm:$0xff]  }
 0x9d9   :  { %v3640_v43 = vpop.eup %3639  ;;  %v2346_v23 = vmul.f32 %v3638_v54, %v2276_v40  ;;  %3222 = vmatpush3.bf16.msra.mxu1 %v3296_v12 }
 0x9da   :  { %v2344_v51 = vmul.f32 %v3640_v43, %v2268_v55 }
 0x9db   :  { %v2352_v41 = vpack.c.bf16 %v2346_v23, %v2345_v38 }
 0x9dc   :  { %v2351_v2 = vpack.c.bf16 %v2344_v51, %v2343_v49 }
 0x9de   :  { %v3642_v45 = vpop.eup %3641  ;;  %3190 = vmatpush3.bf16.msra.mxu0 %v2351_v2 }
 0x9df   :  { %v3644_v3 = vpop.eup %3643  ;;  %3191 = vmatprep.subr.bf16.mxu0 %v4870_v15  ;;  %v2349_v31 = vmul.f32 %v3642_v45, %v2289_v18 }
 0x9e0   :  { %v3646_v9 = vpop.eup %3645  ;;  %v2347_v16 = vmul.f32 %v3644_v3, %v2281_v7 }
 0x9e1   :  { %v3648_v50 = vpop.eup %3647  ;;  %v2350_v27 = vmul.f32 %v3646_v9, %v2292_v8 }
 0x9e2   :  { %v2348_v13 = vmul.f32 %v3648_v50, %v2284_v33  ;;  %3192 = vmatpush3.bf16.msra.mxu0 %v2352_v41 }
 0x9e3   :  { %v2354_v60 = vpack.c.bf16 %v2350_v27, %v2349_v31  ;;  %3193 = vmatprep.subr.bf16.mxu0 %v4870_v15 }
 0x9e4   :  { %v2353_v28 = vpack.c.bf16 %v2348_v13, %v2347_v16 }
 0x9e6   :  { %3194 = vmatpush3.bf16.msra.mxu0 %v2353_v28 }
 0x9e7   :  { %3195 = vmatprep.subr.bf16.mxu0 %v4870_v15 }
 0x9ea   :  { %3196 = vmatpush3.bf16.msra.mxu0 %v2354_v60 }
 0x9eb   :  { %3201 = vmatprep.subr.bf16.mxu0 %v4870_v15 }
 0x9ed   :  { %3198 = vmatmul.mubr.msk.bf16.vlgmr.msra.gmra.mrb[60].mxu0 %vm851_vm3, %v223_v34 }
 0x9ee   :  { %3202 = vmatpush3.bf16.msra.mxu0 %v2417_v6  ;;  %3203 = vmatprep.mubr.msk.bf16.mxu0 %vm3702_vm1, %v4870_v15 }
 0x9f5   :  { %3204 = vmatmul.mubr.msk.bf16.vlgmr.msra.gmra.mrb[64].mxu0 %vm287_vm2, %v4872_v58 }
 0xac0   :  { %v2392_v46 = vpop.f32.mrb[60].mxu0 }
 0xac1   :  { %v2414_v37 = vpack.c.bf16 %v2392_v46, %v2392_v46  ;;  %v3199_v40 = vpop.f32.mrb[61].mxu0 }
 0xac2   :  { %v2395_v32 = vpop.f32.mrb[62].mxu0 }
 0xac3   :  { %v3200_v21 = vpop.f32.mrb[63].mxu0  ;;  %3224 = vmatmul.mubr.bf16.vlgmr.msra.gmra.mrb[48].mxu1 %v2414_v37 }
 0xac8   :  { %v2453_v55 = vpop.f32.mrb[64].mxu0 }
 0xac9   :  { %v3205_v56 = vpop.f32.mrb[65].mxu0 }
 0xaca   :  { %v2456_v48 = vpop.f32.mrb[66].mxu0 }
 0xacb   :  { %v3206_v59 = vpop.f32.mrb[67].mxu0 }
 0xacc   :  { %3664 = shalt.err (!%p3661_p4)
}
 0xacd   :  { %s3665_s16 = scalar_lea.hbm %s4801_s22, 1024 }
 0xace   :  { %p3666_p5 = scmp.ne.s32.totalorder %s4801_s22, %s3665_s16  ;;  %p3669_p6 = scmp.lt.u32.totalorder %s3665_s16, %s4801_s22 }
 0xad0   :  { %p3671_p7 = pnand %p3669_p6, %p3666_p5 }
 0xad2   :  { %3674 = shalt.err (!%p3671_p7)
}
 0xad3   :  { %s3706_s8 = smov 128   ;;  %s3707_s4 = smov 8   ;;  %v2803_v18 = vld [vmem:[%s4800_s21] ss:$0 sm:$0xff] }
 0xad4   :  { %2574 = dma.vmem_to_hbm [thread:$0]  %s2569_s7, 1024, %s4801_s22, [#allocation3], %s3706_s8, %s3706_s8, %s3707_s4  }
 0xad5   :  { %s3708_s30 = smov [#allocation4]  }
 0xad6   :  { %s2581_s12 = sshll.u32 %s3708_s30, 4  ;;  %s2582_s12 = int_to_ptr.vmem [resolvable:$true] %s2581_s12 }
 0xad7   :  { %s3675_s22 = scalar_lea.vmem %s2582_s12, 64  ;;  %p3680_p9 = scmp.lt.s32.totalorder %s2582_s12, %s2582_s12 }
 0xad8   :  { %p3676_p8 = scmp.ne.s32.totalorder %s2582_s12, %s3675_s22  ;;  %p3681_p10 = scmp.lt.s32.totalorder %s3675_s22, %s3675_s22 }
 0xada   :  { %p3682_p11 = por %p3681_p10, %p3680_p9 }
 0xadc   :  { %p3683_p12 = pnand %p3682_p11, %p3676_p8 }
 0xb96   :  { %v2541_v15 = vpop.f32.mrb[48].mxu1 }
 0xb97   :  { %v2542_v10 = vadd.f32 %v2541_v15, %v2453_v55  ;;  %v3225_v7 = vpop.f32.mrb[49].mxu1 }
 0xb98   :  { %v2544_v30 = vpop.f32.mrb[50].mxu1 }
 0xb99   :  { %v2554_v25 = vadd.f32 %v2803_v18, %v2542_v10  ;;  %v3226_v8 = vpop.f32.mrb[51].mxu1 }
 0xb9b   :  { %v2804_v17 = vmul.f32 -1.442695, %v2554_v25 }
 0xb9d   :  { %3649 = vpow2.f32 %v2804_v17 }
 0xba7   :  { %v3650_v29 = vpop.eup %3649 }
 0xba8   :  { %v2558_v33 = vadd.f32 1.0, %v3650_v29 }
 0xbaa   :  { %3651 = vrcp.f32 %v2558_v33 }
 0xbb4   :  { %v3652_v4 = vpop.eup %3651 }
 0xbb5   :  { %v2561_v39 = vmul.f32 %v3652_v4, %v2554_v25 }
 0xbb7   :  { %2562 = vst [vmem:[#allocation4] sm:$0xf] %v2561_v39 }
 0xbb8   :  { %3686 = shalt.err (!%p3683_p12)
}
 0xbb9   :  { %s3687_s24 = scalar_lea.hbm %s4802_s23, 64 }
 0xbba   :  { %p3688_p13 = scmp.ne.s32.totalorder %s4802_s23, %s3687_s24  ;;  %p3691_p0 = scmp.lt.u32.totalorder %s3687_s24, %s4802_s23 }
 0xbbc   :  { %p3693_p1 = pnand %p3691_p0, %p3688_p13 }
 0xbbe   :  { %3696 = shalt.err (!%p3693_p1)
}
 0xbbf   :  { %2584 = dma.vmem_to_hbm [thread:$0]  %s2582_s12, 64, %s4802_s23, [#allocation5]  }
 0xbc0   :  { %3697 = dma.done.wait [#allocation3], 1024  }
 0xbc1   :  { %3698 = vsyncadd [#allocation3], 4294966272 }
 0xbc2   :  { %3699 = dma.done.wait [#allocation5], 64  }
 0xbc3   :  { %3700 = vsyncadd [#allocation5], 4294967232 }
 0xbc4   :  { %2591 = vsyncpa [#allocation3], 1 }
 0xbc5   :  { %2592 = vsyncpa [#allocation5], 1 }

</bundles_post_ra>
